<compile_context>
chip_gen: v7x
topology: tpu7x:2x2x1
jax: 0.10.0
libtpu: 0.0.40
codegen_flags: <defaults>
</compile_context>

<pallas_src>
import jax
import jax.numpy as jnp
from jax import lax
from jax.experimental import pallas as pl
from jax.experimental.pallas import tpu as pltpu

OUT_LANES = 128  # lane-dense FC output width (real output lives in column 0)


def _round_up(x, m):
    return ((x + m - 1) // m) * m


def btc_lstm_kernel(x_ref, wih_ref, whh_ref, b_ref, wfc_ref, bfc_ref,
                    out_ref, h_ref, c_ref, xg_ref):
    """One time-block of the recurrence; FC+sigmoid emitted on the last block."""
    t_blk, b_pad, _ = x_ref.shape
    hp = whh_ref.shape[0]            # padded hidden size (multiple of 128)
    g = wih_ref.shape[1]             # 4 * hp

    # --- init resident h/c state on the first time block ---------------------
    @pl.when(pl.program_id(0) == 0)
    def _():
        h_ref[...] = jnp.zeros_like(h_ref)
        c_ref[...] = jnp.zeros_like(c_ref)

    # --- hoisted input projection: one MXU matmul for the whole block --------
    # x block is f32 and (8,128)-tile aligned, so the flatten is a layout no-op;
    # cast to bf16 right before the MXU push (f32 accumulate).
    x_flat = x_ref[...].reshape(t_blk * b_pad, -1).astype(jnp.bfloat16)
    xg = jnp.dot(x_flat, wih_ref[...], preferred_element_type=jnp.float32)
    xg_ref[...] = (xg + b_ref[...]).reshape(t_blk, b_pad, g)  # bias folded once

    whh = whh_ref[...]               # bf16 recurrent weights, loaded once

    # --- serial recurrence: one matmul + gate math per step -------------------
    def step(t, carry):
        h, c = carry
        gates = xg_ref[t] + jnp.dot(h.astype(jnp.bfloat16), whh,
                                    preferred_element_type=jnp.float32)
        # gate order matches PyTorch nn.LSTM: [i, f, g, o]; each slice is a
        # full 128-lane-aligned segment (hp is a multiple of 128).
        i_g = jax.nn.sigmoid(gates[:, 0 * hp:1 * hp])
        f_g = jax.nn.sigmoid(gates[:, 1 * hp:2 * hp])
        g_g = jnp.tanh(gates[:, 2 * hp:3 * hp])
        o_g = jax.nn.sigmoid(gates[:, 3 * hp:4 * hp])
        c_new = f_g * c + i_g * g_g
        h_new = o_g * jnp.tanh(c_new)
        return h_new, c_new

    h, c = lax.fori_loop(0, t_blk, step, (h_ref[...], c_ref[...]), unroll=True)
    h_ref[...] = h
    c_ref[...] = c

    # --- final FC + sigmoid into a lane-dense buffer (last block only) -------
    @pl.when(pl.program_id(0) == pl.num_programs(0) - 1)
    def _():
        logits = jnp.dot(h.astype(jnp.bfloat16), wfc_ref[...],
                         preferred_element_type=jnp.float32) + bfc_ref[...]
        out_ref[...] = jax.nn.sigmoid(logits)


def _pad_gate_matrix(w_t, k, k_pad, h, h_pad, dtype):
    """(k, 4h) with gate order [i,f,g,o] -> (k_pad, 4*h_pad), zero-padded per gate."""
    w4 = w_t.reshape(k, 4, h).astype(dtype)
    out = jnp.zeros((k_pad, 4, h_pad), dtype).at[:k, :, :h].set(w4)
    return out.reshape(k_pad, 4 * h_pad)


def _pick_t_block(t, cap=32):
    """Largest divisor of T <= cap (keeps the time grid exact; no masking needed)."""
    for cand in range(min(t, cap), 0, -1):
        if t % cand == 0:
            return cand
    return 1


def btc_lstm_forward(x, params):
    """x: (B, T, I) float32, batch_first like the PyTorch module. Returns (B, 1)."""
    B, T, I = x.shape
    w_ih, w_hh = params["w_ih"], params["w_hh"]
    b_ih, b_hh = params["b_ih"], params["b_hh"]
    w_fc, b_fc = params["w_fc"], params["b_fc"]
    H = w_hh.shape[1]

    B_pad = _round_up(B, 8)          # unmasked sublane stores / full MXU rows
    H_pad = _round_up(H, 128)        # lane-aligned gate segments
    I_pad = _round_up(I, 128)        # lane-dense x tiles
    G = 4 * H_pad

    # Time-major, zero-padded x (kept f32 so the in-kernel flatten is tile-exact).
    # TODO(synk): for very long T, fold this transpose into the streaming index_map
    # instead of materializing it in HBM.
    x_tm = jnp.transpose(x, (1, 0, 2)).astype(jnp.float32)
    x_p = jnp.zeros((T, B_pad, I_pad), jnp.float32).at[:, :B, :I].set(x_tm)

    # Pre-transposed, gate-padded weights (bf16 for the MXU, f32 biases).
    wih_p = _pad_gate_matrix(w_ih.T, I, I_pad, H, H_pad, jnp.bfloat16)   # (I_pad, G)
    whh_p = _pad_gate_matrix(w_hh.T, H, H_pad, H, H_pad, jnp.bfloat16)   # (H_pad, G)
    b4 = (b_ih + b_hh).reshape(4, H).astype(jnp.float32)
    b_p = jnp.zeros((1, 4, H_pad), jnp.float32).at[0, :, :H].set(b4).reshape(1, G)
    wfc_p = jnp.zeros((H_pad, OUT_LANES), jnp.bfloat16).at[:H, :1].set(
        w_fc.T.astype(jnp.bfloat16))
    bfc_p = jnp.zeros((1, OUT_LANES), jnp.float32).at[:, :1].set(
        b_fc.reshape(1, 1).astype(jnp.float32))

    t_blk = _pick_t_block(T)
    grid = (T // t_blk,)

    def full_spec(shape):
        return pl.BlockSpec(shape, lambda t: (0,) * len(shape))

    out = pl.pallas_call(
        btc_lstm_kernel,
        out_shape=jax.ShapeDtypeStruct((B_pad, OUT_LANES), jnp.float32),
        grid_spec=pltpu.PrefetchScalarGridSpec(
            num_scalar_prefetch=0,
            grid=grid,
            in_specs=[
                pl.BlockSpec((t_blk, B_pad, I_pad), lambda t: (t, 0, 0)),  # streamed x
                full_spec(wih_p.shape),
                full_spec(whh_p.shape),
                full_spec(b_p.shape),
                full_spec(wfc_p.shape),
                full_spec(bfc_p.shape),
            ],
            out_specs=pl.BlockSpec((B_pad, OUT_LANES), lambda t: (0, 0)),
            scratch_shapes=[
                pltpu.VMEM((B_pad, H_pad), jnp.float32),       # h state
                pltpu.VMEM((B_pad, H_pad), jnp.float32),       # c state
                pltpu.VMEM((t_blk, B_pad, G), jnp.float32),    # precomputed input gates
            ],
        ),
        compiler_params=pltpu.CompilerParams(
            dimension_semantics=("arbitrary",),   # serial recurrence over time blocks
            vmem_limit_bytes=32 * 1024 * 1024,    # explicit budget (v7x-safe)
        ),
    )(x_p, wih_p, whh_p, b_p, wfc_p, bfc_p)

    return out[:B, :1]


def lstm_reference(x, params):
    """Pure-JAX f32 reference matching PyTorch nn.LSTM(batch_first) + Linear + Sigmoid."""
    w_ih, w_hh, b_ih, b_hh, w_fc, b_fc = (
        params["w_ih"], params["w_hh"], params["b_ih"],
        params["b_hh"], params["w_fc"], params["b_fc"],
    )
    B, T, I = x.shape
    H = w_hh.shape[1]
    h = jnp.zeros((B, H), jnp.float32)
    c = jnp.zeros((B, H), jnp.float32)

    def step(carry, x_t):
        h, c = carry
        gates = x_t @ w_ih.T + b_ih + h @ w_hh.T + b_hh
        i_g = jax.nn.sigmoid(gates[:, 0 * H:1 * H])
        f_g = jax.nn.sigmoid(gates[:, 1 * H:2 * H])
        g_g = jnp.tanh(gates[:, 2 * H:3 * H])
        o_g = jax.nn.sigmoid(gates[:, 3 * H:4 * H])
        c_new = f_g * c + i_g * g_g
        h_new = o_g * jnp.tanh(c_new)
        return (h_new, c_new), None

    (h, _), _ = jax.lax.scan(step, (h, c), jnp.transpose(x, (1, 0, 2)))
    return jax.nn.sigmoid(h @ w_fc.T + b_fc)


def init_params(key, input_size, hidden_size):
    """Deterministic init mimicking PyTorch's U(-1/sqrt(H), 1/sqrt(H))."""
    k = 1.0 / jnp.sqrt(hidden_size)
    keys = jax.random.split(key, 6)
    H, I = hidden_size, input_size
    return {
        "w_ih": jax.random.uniform(keys[0], (4 * H, I), jnp.float32, -k, k),
        "w_hh": jax.random.uniform(keys[1], (4 * H, H), jnp.float32, -k, k),
        "b_ih": jax.random.uniform(keys[2], (4 * H,), jnp.float32, -k, k),
        "b_hh": jax.random.uniform(keys[3], (4 * H,), jnp.float32, -k, k),
        "w_fc": jax.random.uniform(keys[4], (1, H), jnp.float32, -k, k),
        "b_fc": jax.random.uniform(keys[5], (1,), jnp.float32, -k, k),
    }


if __name__ == "__main__":
    B, T, I, H = 2, 8, 1, 32   # small shapes; module default input_size=1
    key = jax.random.PRNGKey(0)
    k_x, k_p = jax.random.split(key)
    x = jax.random.normal(k_x, (B, T, I), jnp.float32)
    params = init_params(k_p, I, H)

    out = jax.block_until_ready(btc_lstm_forward(x, params))
    ref = jax.block_until_ready(lstm_reference(x, params))

    assert out.shape == (B, 1), out.shape
    # bf16 MXU weights with f32 accumulation -> slightly looser tolerance vs f32 ref.
    assert jnp.allclose(out, ref, atol=5e-3, rtol=1e-5), (out, ref)

    print("KERNEL_OK")
</pallas_src>

<mosaic_0001>
module attributes {stable_mosaic.version = 11 : i64} {
  func.func @btc_lstm_kernel(%arg0: i32, %arg1: memref<8x8x128xf32, #tpu.memory_space<vmem>>, %arg2: memref<128x512xbf16, #tpu.memory_space<vmem>>, %arg3: memref<128x512xbf16, #tpu.memory_space<vmem>>, %arg4: memref<1x512xf32, #tpu.memory_space<vmem>>, %arg5: memref<128x128xbf16, #tpu.memory_space<vmem>>, %arg6: memref<1x128xf32, #tpu.memory_space<vmem>>, %arg7: memref<8x128xf32, #tpu.memory_space<vmem>>, %arg8: memref<8x128xf32, #tpu.memory_space<vmem>>, %arg9: memref<8x128xf32, #tpu.memory_space<vmem>>, %arg10: memref<8x8x512xf32, #tpu.memory_space<vmem>>) attributes {dimension_semantics = [#tpu.dimension_semantics<arbitrary>], iteration_bounds = array<i64: 1>, scalar_prefetch = 0 : i64, scratch_operands = 3 : i64, tpu.core_type = #tpu.core_type<tc>, window_params = [{transform_indices = @transform_0, window_bounds = array<i64: 8, 8, 128>}, {pipeline_mode = #tpu.pipeline_mode<synchronous>, transform_indices = @transform_1, window_bounds = array<i64: 128, 512>}, {pipeline_mode = #tpu.pipeline_mode<synchronous>, transform_indices = @transform_2, window_bounds = array<i64: 128, 512>}, {pipeline_mode = #tpu.pipeline_mode<synchronous>, transform_indices = @transform_3, window_bounds = array<i64: 1, 512>}, {pipeline_mode = #tpu.pipeline_mode<synchronous>, transform_indices = @transform_4, window_bounds = array<i64: 128, 128>}, {pipeline_mode = #tpu.pipeline_mode<synchronous>, transform_indices = @transform_5, window_bounds = array<i64: 1, 128>}, {pipeline_mode = #tpu.pipeline_mode<synchronous>, transform_indices = @transform_6, window_bounds = array<i64: 8, 128>}]} {
    %c0_i32 = arith.constant 0 : i32
    %0 = arith.cmpi eq, %arg0, %c0_i32 : i32
    %1 = arith.extui %0 : i1 to i32
    %c0_i32_0 = arith.constant 0 : i32
    %2 = arith.cmpi ne, %1, %c0_i32_0 : i32
    scf.if %2 {
      %cst_71 = arith.constant 0.000000e+00 : f32
      %269 = vector.broadcast %cst_71 : f32 to vector<8x128xf32>
      %c0_72 = arith.constant 0 : index
      %c0_73 = arith.constant 0 : index
      %270 = vector.load %arg8[%c0_72, %c0_73] : memref<8x128xf32, #tpu.memory_space<vmem>>, vector<8x128xf32>
      tpu.vector_store %arg8[%c0_72, %c0_73], %269 {strides = array<i32>} : memref<8x128xf32, #tpu.memory_space<vmem>>, vector<8x128xf32>,
      %cst_74 = arith.constant 0.000000e+00 : f32
      %271 = vector.broadcast %cst_74 : f32 to vector<8x128xf32>
      %c0_75 = arith.constant 0 : index
      %c0_76 = arith.constant 0 : index
      %272 = vector.load %arg9[%c0_75, %c0_76] : memref<8x128xf32, #tpu.memory_space<vmem>>, vector<8x128xf32>
      tpu.vector_store %arg9[%c0_75, %c0_76], %271 {strides = array<i32>} : memref<8x128xf32, #tpu.memory_space<vmem>>, vector<8x128xf32>,
    } else {
    }
    %c0 = arith.constant 0 : index
    %c0_1 = arith.constant 0 : index
    %c0_2 = arith.constant 0 : index
    %3 = vector.load %arg1[%c0, %c0_1, %c0_2] : memref<8x8x128xf32, #tpu.memory_space<vmem>>, vector<8x8x128xf32>
    %4 = vector.shape_cast %3 : vector<8x8x128xf32> to vector<64x128xf32>
    %5 = arith.truncf %4 : vector<64x128xf32> to vector<64x128xbf16>
    %c0_3 = arith.constant 0 : index
    %c0_4 = arith.constant 0 : index
    %6 = vector.load %arg2[%c0_3, %c0_4] : memref<128x512xbf16, #tpu.memory_space<vmem>>, vector<128x512xbf16>
    %cst = arith.constant dense<0.000000e+00> : vector<64x512xf32>
    %7 = tpu.matmul %5, %6, %cst {dimension_numbers = #tpu.dot_dimension_numbers<[1], [0], [0], [1], [0, 0, 1, 1], [], []>} : vector<64x128xbf16>, vector<128x512xbf16>, vector<64x512xf32> -> vector<64x512xf32>
    %c0_5 = arith.constant 0 : index
    %c0_6 = arith.constant 0 : index
    %8 = vector.load %arg4[%c0_5, %c0_6] : memref<1x512xf32, #tpu.memory_space<vmem>>, vector<1x512xf32>
    %9 = vector.broadcast %8 : vector<1x512xf32> to vector<64x512xf32>
    %10 = arith.addf %7, %9 : vector<64x512xf32>
    %11 = vector.shape_cast %10 : vector<64x512xf32> to vector<8x8x512xf32>
    %c0_7 = arith.constant 0 : index
    %c0_8 = arith.constant 0 : index
    %c0_9 = arith.constant 0 : index
    %12 = vector.load %arg10[%c0_7, %c0_8, %c0_9] : memref<8x8x512xf32, #tpu.memory_space<vmem>>, vector<8x8x512xf32>
    tpu.vector_store %arg10[%c0_7, %c0_8, %c0_9], %11 {strides = array<i32>} : memref<8x8x512xf32, #tpu.memory_space<vmem>>, vector<8x8x512xf32>,
    %c0_10 = arith.constant 0 : index
    %c0_11 = arith.constant 0 : index
    %13 = vector.load %arg3[%c0_10, %c0_11] : memref<128x512xbf16, #tpu.memory_space<vmem>>, vector<128x512xbf16>
    %c0_12 = arith.constant 0 : index
    %c0_13 = arith.constant 0 : index
    %14 = vector.load %arg8[%c0_12, %c0_13] : memref<8x128xf32, #tpu.memory_space<vmem>>, vector<8x128xf32>
    %c0_14 = arith.constant 0 : index
    %c0_15 = arith.constant 0 : index
    %15 = vector.load %arg9[%c0_14, %c0_15] : memref<8x128xf32, #tpu.memory_space<vmem>>, vector<8x128xf32>
    %c0_i32_16 = arith.constant 0 : i32
    %16 = arith.index_cast %c0_i32_16 : i32 to index
    %c0_17 = arith.constant 0 : index
    %c0_18 = arith.constant 0 : index
    %17 = vector.load %arg10[%16, %c0_17, %c0_18] : memref<8x8x512xf32, #tpu.memory_space<vmem>>, vector<1x8x512xf32>
    %18 = vector.shape_cast %17 : vector<1x8x512xf32> to vector<8x512xf32>
    %19 = arith.truncf %14 : vector<8x128xf32> to vector<8x128xbf16>
    %cst_19 = arith.constant dense<0.000000e+00> : vector<8x512xf32>
    %20 = tpu.matmul %19, %13, %cst_19 {dimension_numbers = #tpu.dot_dimension_numbers<[1], [0], [0], [1], [0, 0, 1, 1], [], []>} : vector<8x128xbf16>, vector<128x512xbf16>, vector<8x512xf32> -> vector<8x512xf32>
    %21 = arith.addf %18, %20 : vector<8x512xf32>
    %22 = vector.extract_strided_slice %21 {offsets = [0, 0], sizes = [8, 128], strides = [1, 1]} : vector<8x512xf32> to vector<8x128xf32>
    %23 = arith.negf %22 : vector<8x128xf32>
    %24 = math.exp %23 : vector<8x128xf32>
    %cst_20 = arith.constant 1.000000e+00 : f32
    %25 = vector.broadcast %cst_20 : f32 to vector<8x128xf32>
    %26 = arith.addf %25, %24 : vector<8x128xf32>
    %27 = arith.divf %25, %26 : vector<8x128xf32>
    %28 = vector.extract_strided_slice %21 {offsets = [0, 128], sizes = [8, 128], strides = [1, 1]} : vector<8x512xf32> to vector<8x128xf32>
    %29 = arith.negf %28 : vector<8x128xf32>
    %30 = math.exp %29 : vector<8x128xf32>
    %cst_21 = arith.constant 1.000000e+00 : f32
    %31 = vector.broadcast %cst_21 : f32 to vector<8x128xf32>
    %32 = arith.addf %31, %30 : vector<8x128xf32>
    %33 = arith.divf %31, %32 : vector<8x128xf32>
    %34 = vector.extract_strided_slice %21 {offsets = [0, 256], sizes = [8, 128], strides = [1, 1]} : vector<8x512xf32> to vector<8x128xf32>
    %35 = math.tanh %34 : vector<8x128xf32>
    %36 = vector.extract_strided_slice %21 {offsets = [0, 384], sizes = [8, 128], strides = [1, 1]} : vector<8x512xf32> to vector<8x128xf32>
    %37 = arith.negf %36 : vector<8x128xf32>
    %38 = math.exp %37 : vector<8x128xf32>
    %cst_22 = arith.constant 1.000000e+00 : f32
    %39 = vector.broadcast %cst_22 : f32 to vector<8x128xf32>
    %40 = arith.addf %39, %38 : vector<8x128xf32>
    %41 = arith.divf %39, %40 : vector<8x128xf32>
    %42 = arith.mulf %33, %15 : vector<8x128xf32>
    %43 = arith.mulf %27, %35 : vector<8x128xf32>
    %44 = arith.addf %42, %43 : vector<8x128xf32>
    %45 = math.tanh %44 : vector<8x128xf32>
    %46 = arith.mulf %41, %45 : vector<8x128xf32>
    %c1_i32 = arith.constant 1 : i32
    %47 = arith.index_cast %c1_i32 : i32 to index
    %c0_23 = arith.constant 0 : index
    %c0_24 = arith.constant 0 : index
    %48 = vector.load %arg10[%47, %c0_23, %c0_24] : memref<8x8x512xf32, #tpu.memory_space<vmem>>, vector<1x8x512xf32>
    %49 = vector.shape_cast %48 : vector<1x8x512xf32> to vector<8x512xf32>
    %50 = arith.truncf %46 : vector<8x128xf32> to vector<8x128xbf16>
    %cst_25 = arith.constant dense<0.000000e+00> : vector<8x512xf32>
    %51 = tpu.matmul %50, %13, %cst_25 {dimension_numbers = #tpu.dot_dimension_numbers<[1], [0], [0], [1], [0, 0, 1, 1], [], []>} : vector<8x128xbf16>, vector<128x512xbf16>, vector<8x512xf32> -> vector<8x512xf32>
    %52 = arith.addf %49, %51 : vector<8x512xf32>
    %53 = vector.extract_strided_slice %52 {offsets = [0, 0], sizes = [8, 128], strides = [1, 1]} : vector<8x512xf32> to vector<8x128xf32>
    %54 = arith.negf %53 : vector<8x128xf32>
    %55 = math.exp %54 : vector<8x128xf32>
    %cst_26 = arith.constant 1.000000e+00 : f32
    %56 = vector.broadcast %cst_26 : f32 to vector<8x128xf32>
    %57 = arith.addf %56, %55 : vector<8x128xf32>
    %58 = arith.divf %56, %57 : vector<8x128xf32>
    %59 = vector.extract_strided_slice %52 {offsets = [0, 128], sizes = [8, 128], strides = [1, 1]} : vector<8x512xf32> to vector<8x128xf32>
    %60 = arith.negf %59 : vector<8x128xf32>
    %61 = math.exp %60 : vector<8x128xf32>
    %cst_27 = arith.constant 1.000000e+00 : f32
    %62 = vector.broadcast %cst_27 : f32 to vector<8x128xf32>
    %63 = arith.addf %62, %61 : vector<8x128xf32>
    %64 = arith.divf %62, %63 : vector<8x128xf32>
    %65 = vector.extract_strided_slice %52 {offsets = [0, 256], sizes = [8, 128], strides = [1, 1]} : vector<8x512xf32> to vector<8x128xf32>
    %66 = math.tanh %65 : vector<8x128xf32>
    %67 = vector.extract_strided_slice %52 {offsets = [0, 384], sizes = [8, 128], strides = [1, 1]} : vector<8x512xf32> to vector<8x128xf32>
    %68 = arith.negf %67 : vector<8x128xf32>
    %69 = math.exp %68 : vector<8x128xf32>
    %cst_28 = arith.constant 1.000000e+00 : f32
    %70 = vector.broadcast %cst_28 : f32 to vector<8x128xf32>
    %71 = arith.addf %70, %69 : vector<8x128xf32>
    %72 = arith.divf %70, %71 : vector<8x128xf32>
    %73 = arith.mulf %64, %44 : vector<8x128xf32>
    %74 = arith.mulf %58, %66 : vector<8x128xf32>
    %75 = arith.addf %73, %74 : vector<8x128xf32>
    %76 = math.tanh %75 : vector<8x128xf32>
    %77 = arith.mulf %72, %76 : vector<8x128xf32>
    %c2_i32 = arith.constant 2 : i32
    %78 = arith.index_cast %c2_i32 : i32 to index
    %c0_29 = arith.constant 0 : index
    %c0_30 = arith.constant 0 : index
    %79 = vector.load %arg10[%78, %c0_29, %c0_30] : memref<8x8x512xf32, #tpu.memory_space<vmem>>, vector<1x8x512xf32>
    %80 = vector.shape_cast %79 : vector<1x8x512xf32> to vector<8x512xf32>
    %81 = arith.truncf %77 : vector<8x128xf32> to vector<8x128xbf16>
    %cst_31 = arith.constant dense<0.000000e+00> : vector<8x512xf32>
    %82 = tpu.matmul %81, %13, %cst_31 {dimension_numbers = #tpu.dot_dimension_numbers<[1], [0], [0], [1], [0, 0, 1, 1], [], []>} : vector<8x128xbf16>, vector<128x512xbf16>, vector<8x512xf32> -> vector<8x512xf32>
    %83 = arith.addf %80, %82 : vector<8x512xf32>
    %84 = vector.extract_strided_slice %83 {offsets = [0, 0], sizes = [8, 128], strides = [1, 1]} : vector<8x512xf32> to vector<8x128xf32>
    %85 = arith.negf %84 : vector<8x128xf32>
    %86 = math.exp %85 : vector<8x128xf32>
    %cst_32 = arith.constant 1.000000e+00 : f32
    %87 = vector.broadcast %cst_32 : f32 to vector<8x128xf32>
    %88 = arith.addf %87, %86 : vector<8x128xf32>
    %89 = arith.divf %87, %88 : vector<8x128xf32>
    %90 = vector.extract_strided_slice %83 {offsets = [0, 128], sizes = [8, 128], strides = [1, 1]} : vector<8x512xf32> to vector<8x128xf32>
    %91 = arith.negf %90 : vector<8x128xf32>
    %92 = math.exp %91 : vector<8x128xf32>
    %cst_33 = arith.constant 1.000000e+00 : f32
    %93 = vector.broadcast %cst_33 : f32 to vector<8x128xf32>
    %94 = arith.addf %93, %92 : vector<8x128xf32>
    %95 = arith.divf %93, %94 : vector<8x128xf32>
    %96 = vector.extract_strided_slice %83 {offsets = [0, 256], sizes = [8, 128], strides = [1, 1]} : vector<8x512xf32> to vector<8x128xf32>
    %97 = math.tanh %96 : vector<8x128xf32>
    %98 = vector.extract_strided_slice %83 {offsets = [0, 384], sizes = [8, 128], strides = [1, 1]} : vector<8x512xf32> to vector<8x128xf32>
    %99 = arith.negf %98 : vector<8x128xf32>
    %100 = math.exp %99 : vector<8x128xf32>
    %cst_34 = arith.constant 1.000000e+00 : f32
    %101 = vector.broadcast %cst_34 : f32 to vector<8x128xf32>
    %102 = arith.addf %101, %100 : vector<8x128xf32>
    %103 = arith.divf %101, %102 : vector<8x128xf32>
    %104 = arith.mulf %95, %75 : vector<8x128xf32>
    %105 = arith.mulf %89, %97 : vector<8x128xf32>
    %106 = arith.addf %104, %105 : vector<8x128xf32>
    %107 = math.tanh %106 : vector<8x128xf32>
    %108 = arith.mulf %103, %107 : vector<8x128xf32>
    %c3_i32 = arith.constant 3 : i32
    %109 = arith.index_cast %c3_i32 : i32 to index
    %c0_35 = arith.constant 0 : index
    %c0_36 = arith.constant 0 : index
    %110 = vector.load %arg10[%109, %c0_35, %c0_36] : memref<8x8x512xf32, #tpu.memory_space<vmem>>, vector<1x8x512xf32>
    %111 = vector.shape_cast %110 : vector<1x8x512xf32> to vector<8x512xf32>
    %112 = arith.truncf %108 : vector<8x128xf32> to vector<8x128xbf16>
    %cst_37 = arith.constant dense<0.000000e+00> : vector<8x512xf32>
    %113 = tpu.matmul %112, %13, %cst_37 {dimension_numbers = #tpu.dot_dimension_numbers<[1], [0], [0], [1], [0, 0, 1, 1], [], []>} : vector<8x128xbf16>, vector<128x512xbf16>, vector<8x512xf32> -> vector<8x512xf32>
    %114 = arith.addf %111, %113 : vector<8x512xf32>
    %115 = vector.extract_strided_slice %114 {offsets = [0, 0], sizes = [8, 128], strides = [1, 1]} : vector<8x512xf32> to vector<8x128xf32>
    %116 = arith.negf %115 : vector<8x128xf32>
    %117 = math.exp %116 : vector<8x128xf32>
    %cst_38 = arith.constant 1.000000e+00 : f32
    %118 = vector.broadcast %cst_38 : f32 to vector<8x128xf32>
    %119 = arith.addf %118, %117 : vector<8x128xf32>
    %120 = arith.divf %118, %119 : vector<8x128xf32>
    %121 = vector.extract_strided_slice %114 {offsets = [0, 128], sizes = [8, 128], strides = [1, 1]} : vector<8x512xf32> to vector<8x128xf32>
    %122 = arith.negf %121 : vector<8x128xf32>
    %123 = math.exp %122 : vector<8x128xf32>
    %cst_39 = arith.constant 1.000000e+00 : f32
    %124 = vector.broadcast %cst_39 : f32 to vector<8x128xf32>
    %125 = arith.addf %124, %123 : vector<8x128xf32>
    %126 = arith.divf %124, %125 : vector<8x128xf32>
    %127 = vector.extract_strided_slice %114 {offsets = [0, 256], sizes = [8, 128], strides = [1, 1]} : vector<8x512xf32> to vector<8x128xf32>
    %128 = math.tanh %127 : vector<8x128xf32>
    %129 = vector.extract_strided_slice %114 {offsets = [0, 384], sizes = [8, 128], strides = [1, 1]} : vector<8x512xf32> to vector<8x128xf32>
    %130 = arith.negf %129 : vector<8x128xf32>
    %131 = math.exp %130 : vector<8x128xf32>
    %cst_40 = arith.constant 1.000000e+00 : f32
    %132 = vector.broadcast %cst_40 : f32 to vector<8x128xf32>
    %133 = arith.addf %132, %131 : vector<8x128xf32>
    %134 = arith.divf %132, %133 : vector<8x128xf32>
    %135 = arith.mulf %126, %106 : vector<8x128xf32>
    %136 = arith.mulf %120, %128 : vector<8x128xf32>
    %137 = arith.addf %135, %136 : vector<8x128xf32>
    %138 = math.tanh %137 : vector<8x128xf32>
    %139 = arith.mulf %134, %138 : vector<8x128xf32>
    %c4_i32 = arith.constant 4 : i32
    %140 = arith.index_cast %c4_i32 : i32 to index
    %c0_41 = arith.constant 0 : index
    %c0_42 = arith.constant 0 : index
    %141 = vector.load %arg10[%140, %c0_41, %c0_42] : memref<8x8x512xf32, #tpu.memory_space<vmem>>, vector<1x8x512xf32>
    %142 = vector.shape_cast %141 : vector<1x8x512xf32> to vector<8x512xf32>
    %143 = arith.truncf %139 : vector<8x128xf32> to vector<8x128xbf16>
    %cst_43 = arith.constant dense<0.000000e+00> : vector<8x512xf32>
    %144 = tpu.matmul %143, %13, %cst_43 {dimension_numbers = #tpu.dot_dimension_numbers<[1], [0], [0], [1], [0, 0, 1, 1], [], []>} : vector<8x128xbf16>, vector<128x512xbf16>, vector<8x512xf32> -> vector<8x512xf32>
    %145 = arith.addf %142, %144 : vector<8x512xf32>
    %146 = vector.extract_strided_slice %145 {offsets = [0, 0], sizes = [8, 128], strides = [1, 1]} : vector<8x512xf32> to vector<8x128xf32>
    %147 = arith.negf %146 : vector<8x128xf32>
    %148 = math.exp %147 : vector<8x128xf32>
    %cst_44 = arith.constant 1.000000e+00 : f32
    %149 = vector.broadcast %cst_44 : f32 to vector<8x128xf32>
    %150 = arith.addf %149, %148 : vector<8x128xf32>
    %151 = arith.divf %149, %150 : vector<8x128xf32>
    %152 = vector.extract_strided_slice %145 {offsets = [0, 128], sizes = [8, 128], strides = [1, 1]} : vector<8x512xf32> to vector<8x128xf32>
    %153 = arith.negf %152 : vector<8x128xf32>
    %154 = math.exp %153 : vector<8x128xf32>
    %cst_45 = arith.constant 1.000000e+00 : f32
    %155 = vector.broadcast %cst_45 : f32 to vector<8x128xf32>
    %156 = arith.addf %155, %154 : vector<8x128xf32>
    %157 = arith.divf %155, %156 : vector<8x128xf32>
    %158 = vector.extract_strided_slice %145 {offsets = [0, 256], sizes = [8, 128], strides = [1, 1]} : vector<8x512xf32> to vector<8x128xf32>
    %159 = math.tanh %158 : vector<8x128xf32>
    %160 = vector.extract_strided_slice %145 {offsets = [0, 384], sizes = [8, 128], strides = [1, 1]} : vector<8x512xf32> to vector<8x128xf32>
    %161 = arith.negf %160 : vector<8x128xf32>
    %162 = math.exp %161 : vector<8x128xf32>
    %cst_46 = arith.constant 1.000000e+00 : f32
    %163 = vector.broadcast %cst_46 : f32 to vector<8x128xf32>
    %164 = arith.addf %163, %162 : vector<8x128xf32>
    %165 = arith.divf %163, %164 : vector<8x128xf32>
    %166 = arith.mulf %157, %137 : vector<8x128xf32>
    %167 = arith.mulf %151, %159 : vector<8x128xf32>
    %168 = arith.addf %166, %167 : vector<8x128xf32>
    %169 = math.tanh %168 : vector<8x128xf32>
    %170 = arith.mulf %165, %169 : vector<8x128xf32>
    %c5_i32 = arith.constant 5 : i32
    %171 = arith.index_cast %c5_i32 : i32 to index
    %c0_47 = arith.constant 0 : index
    %c0_48 = arith.constant 0 : index
    %172 = vector.load %arg10[%171, %c0_47, %c0_48] : memref<8x8x512xf32, #tpu.memory_space<vmem>>, vector<1x8x512xf32>
    %173 = vector.shape_cast %172 : vector<1x8x512xf32> to vector<8x512xf32>
    %174 = arith.truncf %170 : vector<8x128xf32> to vector<8x128xbf16>
    %cst_49 = arith.constant dense<0.000000e+00> : vector<8x512xf32>
    %175 = tpu.matmul %174, %13, %cst_49 {dimension_numbers = #tpu.dot_dimension_numbers<[1], [0], [0], [1], [0, 0, 1, 1], [], []>} : vector<8x128xbf16>, vector<128x512xbf16>, vector<8x512xf32> -> vector<8x512xf32>
    %176 = arith.addf %173, %175 : vector<8x512xf32>
    %177 = vector.extract_strided_slice %176 {offsets = [0, 0], sizes = [8, 128], strides = [1, 1]} : vector<8x512xf32> to vector<8x128xf32>
    %178 = arith.negf %177 : vector<8x128xf32>
    %179 = math.exp %178 : vector<8x128xf32>
    %cst_50 = arith.constant 1.000000e+00 : f32
    %180 = vector.broadcast %cst_50 : f32 to vector<8x128xf32>
    %181 = arith.addf %180, %179 : vector<8x128xf32>
    %182 = arith.divf %180, %181 : vector<8x128xf32>
    %183 = vector.extract_strided_slice %176 {offsets = [0, 128], sizes = [8, 128], strides = [1, 1]} : vector<8x512xf32> to vector<8x128xf32>
    %184 = arith.negf %183 : vector<8x128xf32>
    %185 = math.exp %184 : vector<8x128xf32>
    %cst_51 = arith.constant 1.000000e+00 : f32
    %186 = vector.broadcast %cst_51 : f32 to vector<8x128xf32>
    %187 = arith.addf %186, %185 : vector<8x128xf32>
    %188 = arith.divf %186, %187 : vector<8x128xf32>
    %189 = vector.extract_strided_slice %176 {offsets = [0, 256], sizes = [8, 128], strides = [1, 1]} : vector<8x512xf32> to vector<8x128xf32>
    %190 = math.tanh %189 : vector<8x128xf32>
    %191 = vector.extract_strided_slice %176 {offsets = [0, 384], sizes = [8, 128], strides = [1, 1]} : vector<8x512xf32> to vector<8x128xf32>
    %192 = arith.negf %191 : vector<8x128xf32>
    %193 = math.exp %192 : vector<8x128xf32>
    %cst_52 = arith.constant 1.000000e+00 : f32
    %194 = vector.broadcast %cst_52 : f32 to vector<8x128xf32>
    %195 = arith.addf %194, %193 : vector<8x128xf32>
    %196 = arith.divf %194, %195 : vector<8x128xf32>
    %197 = arith.mulf %188, %168 : vector<8x128xf32>
    %198 = arith.mulf %182, %190 : vector<8x128xf32>
    %199 = arith.addf %197, %198 : vector<8x128xf32>
    %200 = math.tanh %199 : vector<8x128xf32>
    %201 = arith.mulf %196, %200 : vector<8x128xf32>
    %c6_i32 = arith.constant 6 : i32
    %202 = arith.index_cast %c6_i32 : i32 to index
    %c0_53 = arith.constant 0 : index
    %c0_54 = arith.constant 0 : index
    %203 = vector.load %arg10[%202, %c0_53, %c0_54] : memref<8x8x512xf32, #tpu.memory_space<vmem>>, vector<1x8x512xf32>
    %204 = vector.shape_cast %203 : vector<1x8x512xf32> to vector<8x512xf32>
    %205 = arith.truncf %201 : vector<8x128xf32> to vector<8x128xbf16>
    %cst_55 = arith.constant dense<0.000000e+00> : vector<8x512xf32>
    %206 = tpu.matmul %205, %13, %cst_55 {dimension_numbers = #tpu.dot_dimension_numbers<[1], [0], [0], [1], [0, 0, 1, 1], [], []>} : vector<8x128xbf16>, vector<128x512xbf16>, vector<8x512xf32> -> vector<8x512xf32>
    %207 = arith.addf %204, %206 : vector<8x512xf32>
    %208 = vector.extract_strided_slice %207 {offsets = [0, 0], sizes = [8, 128], strides = [1, 1]} : vector<8x512xf32> to vector<8x128xf32>
    %209 = arith.negf %208 : vector<8x128xf32>
    %210 = math.exp %209 : vector<8x128xf32>
    %cst_56 = arith.constant 1.000000e+00 : f32
    %211 = vector.broadcast %cst_56 : f32 to vector<8x128xf32>
    %212 = arith.addf %211, %210 : vector<8x128xf32>
    %213 = arith.divf %211, %212 : vector<8x128xf32>
    %214 = vector.extract_strided_slice %207 {offsets = [0, 128], sizes = [8, 128], strides = [1, 1]} : vector<8x512xf32> to vector<8x128xf32>
    %215 = arith.negf %214 : vector<8x128xf32>
    %216 = math.exp %215 : vector<8x128xf32>
    %cst_57 = arith.constant 1.000000e+00 : f32
    %217 = vector.broadcast %cst_57 : f32 to vector<8x128xf32>
    %218 = arith.addf %217, %216 : vector<8x128xf32>
    %219 = arith.divf %217, %218 : vector<8x128xf32>
    %220 = vector.extract_strided_slice %207 {offsets = [0, 256], sizes = [8, 128], strides = [1, 1]} : vector<8x512xf32> to vector<8x128xf32>
    %221 = math.tanh %220 : vector<8x128xf32>
    %222 = vector.extract_strided_slice %207 {offsets = [0, 384], sizes = [8, 128], strides = [1, 1]} : vector<8x512xf32> to vector<8x128xf32>
    %223 = arith.negf %222 : vector<8x128xf32>
    %224 = math.exp %223 : vector<8x128xf32>
    %cst_58 = arith.constant 1.000000e+00 : f32
    %225 = vector.broadcast %cst_58 : f32 to vector<8x128xf32>
    %226 = arith.addf %225, %224 : vector<8x128xf32>
    %227 = arith.divf %225, %226 : vector<8x128xf32>
    %228 = arith.mulf %219, %199 : vector<8x128xf32>
    %229 = arith.mulf %213, %221 : vector<8x128xf32>
    %230 = arith.addf %228, %229 : vector<8x128xf32>
    %231 = math.tanh %230 : vector<8x128xf32>
    %232 = arith.mulf %227, %231 : vector<8x128xf32>
    %c7_i32 = arith.constant 7 : i32
    %233 = arith.index_cast %c7_i32 : i32 to index
    %c0_59 = arith.constant 0 : index
    %c0_60 = arith.constant 0 : index
    %234 = vector.load %arg10[%233, %c0_59, %c0_60] : memref<8x8x512xf32, #tpu.memory_space<vmem>>, vector<1x8x512xf32>
    %235 = vector.shape_cast %234 : vector<1x8x512xf32> to vector<8x512xf32>
    %236 = arith.truncf %232 : vector<8x128xf32> to vector<8x128xbf16>
    %cst_61 = arith.constant dense<0.000000e+00> : vector<8x512xf32>
    %237 = tpu.matmul %236, %13, %cst_61 {dimension_numbers = #tpu.dot_dimension_numbers<[1], [0], [0], [1], [0, 0, 1, 1], [], []>} : vector<8x128xbf16>, vector<128x512xbf16>, vector<8x512xf32> -> vector<8x512xf32>
    %238 = arith.addf %235, %237 : vector<8x512xf32>
    %239 = vector.extract_strided_slice %238 {offsets = [0, 0], sizes = [8, 128], strides = [1, 1]} : vector<8x512xf32> to vector<8x128xf32>
    %240 = arith.negf %239 : vector<8x128xf32>
    %241 = math.exp %240 : vector<8x128xf32>
    %cst_62 = arith.constant 1.000000e+00 : f32
    %242 = vector.broadcast %cst_62 : f32 to vector<8x128xf32>
    %243 = arith.addf %242, %241 : vector<8x128xf32>
    %244 = arith.divf %242, %243 : vector<8x128xf32>
    %245 = vector.extract_strided_slice %238 {offsets = [0, 128], sizes = [8, 128], strides = [1, 1]} : vector<8x512xf32> to vector<8x128xf32>
    %246 = arith.negf %245 : vector<8x128xf32>
    %247 = math.exp %246 : vector<8x128xf32>
    %cst_63 = arith.constant 1.000000e+00 : f32
    %248 = vector.broadcast %cst_63 : f32 to vector<8x128xf32>
    %249 = arith.addf %248, %247 : vector<8x128xf32>
    %250 = arith.divf %248, %249 : vector<8x128xf32>
    %251 = vector.extract_strided_slice %238 {offsets = [0, 256], sizes = [8, 128], strides = [1, 1]} : vector<8x512xf32> to vector<8x128xf32>
    %252 = math.tanh %251 : vector<8x128xf32>
    %253 = vector.extract_strided_slice %238 {offsets = [0, 384], sizes = [8, 128], strides = [1, 1]} : vector<8x512xf32> to vector<8x128xf32>
    %254 = arith.negf %253 : vector<8x128xf32>
    %255 = math.exp %254 : vector<8x128xf32>
    %cst_64 = arith.constant 1.000000e+00 : f32
    %256 = vector.broadcast %cst_64 : f32 to vector<8x128xf32>
    %257 = arith.addf %256, %255 : vector<8x128xf32>
    %258 = arith.divf %256, %257 : vector<8x128xf32>
    %259 = arith.mulf %250, %230 : vector<8x128xf32>
    %260 = arith.mulf %244, %252 : vector<8x128xf32>
    %261 = arith.addf %259, %260 : vector<8x128xf32>
    %262 = math.tanh %261 : vector<8x128xf32>
    %263 = arith.mulf %258, %262 : vector<8x128xf32>
    %c8_i32 = arith.constant 8 : i32
    %c0_65 = arith.constant 0 : index
    %c0_66 = arith.constant 0 : index
    %264 = vector.load %arg8[%c0_65, %c0_66] : memref<8x128xf32, #tpu.memory_space<vmem>>, vector<8x128xf32>
    tpu.vector_store %arg8[%c0_65, %c0_66], %263 {strides = array<i32>} : memref<8x128xf32, #tpu.memory_space<vmem>>, vector<8x128xf32>,
    %c0_67 = arith.constant 0 : index
    %c0_68 = arith.constant 0 : index
    %265 = vector.load %arg9[%c0_67, %c0_68] : memref<8x128xf32, #tpu.memory_space<vmem>>, vector<8x128xf32>
    tpu.vector_store %arg9[%c0_67, %c0_68], %261 {strides = array<i32>} : memref<8x128xf32, #tpu.memory_space<vmem>>, vector<8x128xf32>,
    %c0_i32_69 = arith.constant 0 : i32
    %266 = arith.cmpi eq, %arg0, %c0_i32_69 : i32
    %267 = arith.extui %266 : i1 to i32
    %c0_i32_70 = arith.constant 0 : i32
    %268 = arith.cmpi ne, %267, %c0_i32_70 : i32
    scf.if %268 {
      %269 = arith.truncf %263 : vector<8x128xf32> to vector<8x128xbf16>
      %c0_71 = arith.constant 0 : index
      %c0_72 = arith.constant 0 : index
      %270 = vector.load %arg5[%c0_71, %c0_72] : memref<128x128xbf16, #tpu.memory_space<vmem>>, vector<128x128xbf16>
      %cst_73 = arith.constant dense<0.000000e+00> : vector<8x128xf32>
      %271 = tpu.matmul %269, %270, %cst_73 {dimension_numbers = #tpu.dot_dimension_numbers<[1], [0], [0], [1], [0, 0, 1, 1], [], []>} : vector<8x128xbf16>, vector<128x128xbf16>, vector<8x128xf32> -> vector<8x128xf32>
      %c0_74 = arith.constant 0 : index
      %c0_75 = arith.constant 0 : index
      %272 = vector.load %arg6[%c0_74, %c0_75] : memref<1x128xf32, #tpu.memory_space<vmem>>, vector<1x128xf32>
      %273 = vector.broadcast %272 : vector<1x128xf32> to vector<8x128xf32>
      %274 = arith.addf %271, %273 : vector<8x128xf32>
      %275 = arith.negf %274 : vector<8x128xf32>
      %276 = math.exp %275 : vector<8x128xf32>
      %cst_76 = arith.constant 1.000000e+00 : f32
      %277 = vector.broadcast %cst_76 : f32 to vector<8x128xf32>
      %278 = arith.addf %277, %276 : vector<8x128xf32>
      %279 = arith.divf %277, %278 : vector<8x128xf32>
      %c0_77 = arith.constant 0 : index
      %c0_78 = arith.constant 0 : index
      %280 = vector.load %arg7[%c0_77, %c0_78] : memref<8x128xf32, #tpu.memory_space<vmem>>, vector<8x128xf32>
      tpu.vector_store %arg7[%c0_77, %c0_78], %279 {strides = array<i32>} : memref<8x128xf32, #tpu.memory_space<vmem>>, vector<8x128xf32>,
    } else {
    }
    return
  }
  func.func @transform_0(%arg0: i32) -> (i32, i32, i32) {
    %c0_i32 = arith.constant 0 : i32
    %c0_i32_0 = arith.constant 0 : i32
    %c0_i32_1 = arith.constant 0 : i32
    return %arg0, %c0_i32, %c0_i32_0 : i32, i32, i32
  }
  func.func @transform_1(%arg0: i32) -> (i32, i32) {
    %c0_i32 = arith.constant 0 : i32
    %c0_i32_0 = arith.constant 0 : i32
    %c0_i32_1 = arith.constant 0 : i32
    return %c0_i32, %c0_i32_0 : i32, i32
  }
  func.func @transform_2(%arg0: i32) -> (i32, i32) {
    %c0_i32 = arith.constant 0 : i32
    %c0_i32_0 = arith.constant 0 : i32
    %c0_i32_1 = arith.constant 0 : i32
    return %c0_i32, %c0_i32_0 : i32, i32
  }
  func.func @transform_3(%arg0: i32) -> (i32, i32) {
    %c0_i32 = arith.constant 0 : i32
    %c0_i32_0 = arith.constant 0 : i32
    %c0_i32_1 = arith.constant 0 : i32
    return %c0_i32, %c0_i32_0 : i32, i32
  }
  func.func @transform_4(%arg0: i32) -> (i32, i32) {
    %c0_i32 = arith.constant 0 : i32
    %c0_i32_0 = arith.constant 0 : i32
    %c0_i32_1 = arith.constant 0 : i32
    return %c0_i32, %c0_i32_0 : i32, i32
  }
  func.func @transform_5(%arg0: i32) -> (i32, i32) {
    %c0_i32 = arith.constant 0 : i32
    %c0_i32_0 = arith.constant 0 : i32
    %c0_i32_1 = arith.constant 0 : i32
    return %c0_i32, %c0_i32_0 : i32, i32
  }
  func.func @transform_6(%arg0: i32) -> (i32, i32) {
    %c0_i32 = arith.constant 0 : i32
    %c0_i32_0 = arith.constant 0 : i32
    %c0_i32_1 = arith.constant 0 : i32
    return %c0_i32, %c0_i32_0 : i32, i32
  }
}

</mosaic_0001>

<bundles_post_ra>
// kernel: tpu_custom_call.1
= control target key start
LH: loop header
LB: loop body
LE: loop exit
PB: predicated region body
PF: predicated region fallthrough
CT: control target
= control target key end

     0   :  { %11 = vsyncpa [#allocation6], 0  ;;  %s2925_s0 = inlined_call_operand.hbm [shape: f32[8,8,128], index: 0, kind: input, shape index: {}]   ;;  %s2926_s1 = inlined_call_operand.hbm [shape: bf16[128,512], index: 1, kind: input, shape index: {}]   ;;  %s2927_s2 = inlined_call_operand.hbm [shape: bf16[128,512], index: 2, kind: input, shape index: {}]   ;;  %s2928_s3 = inlined_call_operand.vmem [shape: f32[1,512], index: 3, kind: input, shape index: {}]   ;;  %s2929_s4 = inlined_call_operand.hbm [shape: bf16[128,128], index: 4, kind: input, shape index: {}]   ;;  %s2930_s5 = inlined_call_operand.vmem [shape: f32[1,128], index: 5, kind: input, shape index: {}]   ;;  %s2931_s6 = inlined_call_operand.hbm [shape: f32[8,128], index: 6, kind: output, shape index: {}]  }
   0x1   :  { %12 = vsyncpa [#allocation9], 0 }
   0x2   :  { %13 = vsyncpa [#allocation12], 0 }
   0x3   :  { %14 = vsyncpa [#allocation7], 0  ;;  %s2280_s21 = smov [#allocation8]   ;;  %s2162_s25 = scalar_lea.hbm %s2926_s1, 4096 }
   0x4   :  { %s32_s22 = sshll.u32 %s2280_s21, 4  ;;  %p2163_p0 = scmp.ne.s32.totalorder %s2926_s1, %s2162_s25  ;;  %s33_s22 = int_to_ptr.vmem [resolvable:$true] %s32_s22 }
   0x5   :  { %p2166_p1 = scmp.lt.u32.totalorder %s2162_s25, %s2926_s1 }
   0x7   :  { %p2168_p2 = pnand %p2166_p1, %p2163_p0 }
   0x9   :  { %2171 = shalt.err (!%p2168_p2)
}
   0xa   :  { %s2172_s30 = scalar_lea.vmem %s33_s22, 4096  ;;  %p2177_p4 = scmp.lt.s32.totalorder %s33_s22, %s33_s22 }
   0xb   :  { %p2173_p3 = scmp.ne.s32.totalorder %s33_s22, %s2172_s30  ;;  %p2178_p5 = scmp.lt.s32.totalorder %s2172_s30, %s2172_s30 }
   0xd   :  { %p2179_p6 = por %p2178_p5, %p2177_p4 }
   0xf   :  { %p2180_p7 = pnand %p2179_p6, %p2173_p3 }
  0x11   :  { %2183 = shalt.err (!%p2180_p7)
}
  0x12   :  { %s2281_s7 = smov 256   ;;  %s2282_s8 = smov 16  }
  0x13   :  { %38 = dma.hbm_to_vmem [thread:$0]  %s2926_s1, 4096, %s33_s22, [#allocation9], %s2281_s7, %s2281_s7, %s2282_s8  }
  0x14   :  { %s2283_s11 = smov [#allocation5]   ;;  %s2184_s15 = scalar_lea.hbm %s2925_s0, 1024 }
  0x15   :  { %s20_s12 = sshll.u32 %s2283_s11, 4  ;;  %p2185_p8 = scmp.ne.s32.totalorder %s2925_s0, %s2184_s15  ;;  %s21_s12 = int_to_ptr.vmem [resolvable:$true] %s20_s12 }
  0x16   :  { %p2188_p9 = scmp.lt.u32.totalorder %s2184_s15, %s2925_s0 }
  0x18   :  { %p2190_p10 = pnand %p2188_p9, %p2185_p8 }
  0x1a   :  { %2193 = shalt.err (!%p2190_p10)
}
  0x1b   :  { %s2194_s20 = scalar_lea.vmem %s21_s12, 1024  ;;  %p2199_p12 = scmp.lt.s32.totalorder %s21_s12, %s21_s12 }
  0x1c   :  { %p2195_p11 = scmp.ne.s32.totalorder %s21_s12, %s2194_s20  ;;  %p2200_p13 = scmp.lt.s32.totalorder %s2194_s20, %s2194_s20 }
  0x1e   :  { %p2201_p0 = por %p2200_p13, %p2199_p12 }
  0x20   :  { %p2202_p1 = pnand %p2201_p0, %p2195_p11 }
  0x22   :  { %2205 = shalt.err (!%p2202_p1)
}
  0x23   :  { %s2284_s1 = smov 128   ;;  %s2285_s21 = smov 8  }
  0x24   :  { %26 = dma.hbm_to_vmem [thread:$0]  %s2925_s0, 1024, %s21_s12, [#allocation6], %s2284_s1, %s2284_s1, %s2285_s21  }
  0x25   :  { %s2286_s24 = smov [#allocation10]   ;;  %s2287_s26 = smov [#allocation11]  }
  0x26   :  { %s44_s25 = sshll.u32 %s2286_s24, 4  ;;  %s58_s27 = sshll.u32 %s2287_s26, 4  ;;  %s45_s25 = int_to_ptr.vmem [resolvable:$true] %s44_s25  ;;  %s2357_s27 = int_to_ptr.vmem [resolvable:$true] %s58_s27 }
  0x27   :  { %s2206_s30 = scalar_lea.hbm %s2927_s2, 4096 }
  0x28   :  { %p2207_p2 = scmp.ne.s32.totalorder %s2927_s2, %s2206_s30  ;;  %p2210_p3 = scmp.lt.u32.totalorder %s2206_s30, %s2927_s2 }
  0x2a   :  { %p2212_p4 = pnand %p2210_p3, %p2207_p2 }
  0x2c   :  { %2215 = shalt.err (!%p2212_p4)
}
  0x2d   :  { %s2216_s0 = scalar_lea.vmem %s45_s25, 4096  ;;  %p2221_p6 = scmp.lt.s32.totalorder %s45_s25, %s45_s25 }
  0x2e   :  { %p2217_p5 = scmp.ne.s32.totalorder %s45_s25, %s2216_s0  ;;  %p2222_p7 = scmp.lt.s32.totalorder %s2216_s0, %s2216_s0 }
  0x30   :  { %p2223_p8 = por %p2222_p7, %p2221_p6 }
  0x32   :  { %p2224_p9 = pnand %p2223_p8, %p2217_p5 }
  0x34   :  { %2227 = shalt.err (!%p2224_p9)
}
  0x35   :  { %50 = dma.hbm_to_vmem [thread:$0]  %s2927_s2, 4096, %s45_s25, [#allocation9], %s2281_s7, %s2281_s7, %s2282_s8  }
  0x36   :  { %s2228_s17 = scalar_lea.hbm %s2929_s4, 1024 }
  0x37   :  { %p2229_p10 = scmp.ne.s32.totalorder %s2929_s4, %s2228_s17  ;;  %p2232_p11 = scmp.lt.u32.totalorder %s2228_s17, %s2929_s4 }
  0x39   :  { %p2234_p12 = pnand %p2232_p11, %p2229_p10 }
  0x3b   :  { %2237 = shalt.err (!%p2234_p12)
}
  0x3c   :  { %s2238_s21 = scalar_lea.vmem %s2357_s27, 1024  ;;  %p2243_p0 = scmp.lt.s32.totalorder %s2357_s27, %s2357_s27 }
  0x3d   :  { %p2239_p13 = scmp.ne.s32.totalorder %s2357_s27, %s2238_s21  ;;  %p2244_p1 = scmp.lt.s32.totalorder %s2238_s21, %s2238_s21 }
  0x3f   :  { %p2245_p2 = por %p2244_p1, %p2243_p0 }
  0x41   :  { %p2246_p3 = pnand %p2245_p2, %p2239_p13 }
  0x43   :  { %2249 = shalt.err (!%p2246_p3)
}
  0x44   :  { %s2288_s2 = smov 64   ;;  %s2289_s7 = smov 4  }
  0x45   :  { %64 = dma.hbm_to_vmem [thread:$0]  %s2929_s4, 1024, %s2357_s27, [#allocation12], %s2288_s2, %s2288_s2, %s2289_s7  }
  0x46   :  { %2272 = dma.done.wait [#allocation6], 1024  }
  0x47   :  { %2273 = vsyncadd [#allocation6], 4294966272 }
  0x48   :  { %2274 = dma.done.wait [#allocation9], 8192  }
  0x49   :  { %2275 = vsyncadd [#allocation9], 4294959104 }
  0x4a   :  { %2276 = dma.done.wait [#allocation12], 1024  }
  0x4b   :  { %2277 = vsyncadd [#allocation12], 4294966272  ;;  %v2932_v0 = vmov 0   ;;  %v1894_v1 = vld [vmem:[#allocation8 + $0x4] ss:$16 sps:$4 sm:$0xff]   ;;  %v87_v34 = vld [vmem:[#allocation5 + $0x8] sm:$0xff] }
  0x4c   :  { %344 = vmatprep.mubr.bf16.mxu0 %v2932_v0  ;;  %417 = vmatprep.mubr.bf16.mxu1 %v2932_v0  ;;  %v1896_v2 = vld [vmem:[#allocation8 + $0xc] ss:$16 sps:$4 sm:$0xff]   ;;  %v1898_v3 = vld [vmem:[#allocation8] ss:$16 sps:$4 sm:$0xff]   ;;  %v1899_v4 = vld [vmem:[#allocation8 + $0x8] ss:$16 sps:$4 sm:$0xff]  }
  0x4d   :  { %312 = vmatprep.subr.bf16.mxu0 %v1894_v1  ;;  %385 = vmatprep.subr.bf16.mxu1 %v1896_v2  ;;  %v1900_v5 = vld [vmem:[#allocation8 + $0x24] ss:$16 sps:$4 sm:$0xff]   ;;  %v1902_v6 = vld [vmem:[#allocation8 + $0x2c] ss:$16 sps:$4 sm:$0xff]   ;;  %v1904_v7 = vld [vmem:[#allocation8 + $0x20] ss:$16 sps:$4 sm:$0xff]  }
  0x4e   :  { %313 = vmatpush1.bf16.msra.mxu0 %v1898_v3  ;;  %386 = vmatpush1.bf16.msra.mxu1 %v1899_v4  ;;  %v1905_v8 = vld [vmem:[#allocation8 + $0x28] ss:$16 sps:$4 sm:$0xff]   ;;  %v1906_v9 = vld [vmem:[#allocation8 + $0x44] ss:$16 sps:$4 sm:$0xff]   ;;  %v1908_v10 = vld [vmem:[#allocation8 + $0x4c] ss:$16 sps:$4 sm:$0xff]  }
  0x4f   :  { %314 = vmatprep.subr.bf16.mxu0 %v1900_v5  ;;  %387 = vmatprep.subr.bf16.mxu1 %v1902_v6  ;;  %v1910_v11 = vld [vmem:[#allocation8 + $0x40] ss:$16 sps:$4 sm:$0xff]   ;;  %v1911_v12 = vld [vmem:[#allocation8 + $0x48] ss:$16 sps:$4 sm:$0xff]   ;;  %v1912_v13 = vld [vmem:[#allocation8 + $0x64] ss:$16 sps:$4 sm:$0xff]  }
  0x50   :  { %v1914_v14 = vld [vmem:[#allocation8 + $0x6c] ss:$16 sps:$4 sm:$0xff]   ;;  %v1916_v15 = vld [vmem:[#allocation8 + $0x60] ss:$16 sps:$4 sm:$0xff]   ;;  %v1917_v16 = vld [vmem:[#allocation8 + $0x68] ss:$16 sps:$4 sm:$0xff]  }
  0x51   :  { %v1918_v17 = vld [vmem:[#allocation8 + $0x84] ss:$16 sps:$4 sm:$0xff]   ;;  %v1920_v18 = vld [vmem:[#allocation8 + $0x8c] ss:$16 sps:$4 sm:$0xff]   ;;  %v1922_v19 = vld [vmem:[#allocation8 + $0x80] ss:$16 sps:$4 sm:$0xff]  }
  0x52   :  { %315 = vmatpush1.bf16.msra.mxu0 %v1904_v7  ;;  %388 = vmatpush1.bf16.msra.mxu1 %v1905_v8  ;;  %v1923_v20 = vld [vmem:[#allocation8 + $0x88] ss:$16 sps:$4 sm:$0xff]   ;;  %v1924_v21 = vld [vmem:[#allocation8 + $0xa4] ss:$16 sps:$4 sm:$0xff]   ;;  %v1926_v22 = vld [vmem:[#allocation8 + $0xac] ss:$16 sps:$4 sm:$0xff]  }
  0x53   :  { %316 = vmatprep.subr.bf16.mxu0 %v1906_v9  ;;  %389 = vmatprep.subr.bf16.mxu1 %v1908_v10  ;;  %v1928_v23 = vld [vmem:[#allocation8 + $0xa0] ss:$16 sps:$4 sm:$0xff]   ;;  %v1929_v24 = vld [vmem:[#allocation8 + $0xa8] ss:$16 sps:$4 sm:$0xff]   ;;  %v1930_v25 = vld [vmem:[#allocation8 + $0xc4] ss:$16 sps:$4 sm:$0xff]  }
  0x54   :  { %v1932_v26 = vld [vmem:[#allocation8 + $0xcc] ss:$16 sps:$4 sm:$0xff]   ;;  %v1934_v27 = vld [vmem:[#allocation8 + $0xc0] ss:$16 sps:$4 sm:$0xff]   ;;  %v1935_v28 = vld [vmem:[#allocation8 + $0xc8] ss:$16 sps:$4 sm:$0xff]  }
  0x55   :  { %v1936_v29 = vld [vmem:[#allocation8 + $0xe4] ss:$16 sps:$4 sm:$0xff]   ;;  %v1938_v30 = vld [vmem:[#allocation8 + $0xec] ss:$16 sps:$4 sm:$0xff]   ;;  %v1940_v31 = vld [vmem:[#allocation8 + $0xe0] ss:$16 sps:$4 sm:$0xff]  }
  0x56   :  { %317 = vmatpush1.bf16.msra.mxu0 %v1910_v11  ;;  %390 = vmatpush1.bf16.msra.mxu1 %v1911_v12  ;;  %v1941_v32 = vld [vmem:[#allocation8 + $0xe8] ss:$16 sps:$4 sm:$0xff]   ;;  %v86_v33 = vld [vmem:[#allocation5] sm:$0xff]  ;;  %v2395_v36 = vld [vmem:[#allocation10 + $0xc] ss:$16 sps:$4 sm:$0xff]   ;;  %vm2293_vm0 = vmmov 0  }
  0x57   :  { %318 = vmatprep.subr.bf16.mxu0 %v1912_v13  ;;  %391 = vmatprep.subr.bf16.mxu1 %v1914_v14  ;;  %v2393_v35 = vld [vmem:[#allocation10 + $0x4] ss:$16 sps:$4 sm:$0xff]   ;;  %v94_v37 = vpack.c.bf16 %v87_v34, %v86_v33  ;;  %v2397_v38 = vld [vmem:[#allocation10] ss:$16 sps:$4 sm:$0xff]   ;;  %v2399_v39 = vld [vmem:[#allocation10 + $0x8] ss:$16 sps:$4 sm:$0xff]  }
  0x58   :  { %v2403_v40 = vld [vmem:[#allocation10 + $0x24] ss:$16 sps:$4 sm:$0xff]   ;;  %v2405_v41 = vld [vmem:[#allocation10 + $0x2c] ss:$16 sps:$4 sm:$0xff]   ;;  %v2407_v42 = vld [vmem:[#allocation10 + $0x20] ss:$16 sps:$4 sm:$0xff]  }
  0x59   :  { %v2409_v43 = vld [vmem:[#allocation10 + $0x28] ss:$16 sps:$4 sm:$0xff]   ;;  %v88_v44 = vld [vmem:[#allocation5 + $0x10] sm:$0xff]  ;;  %v2417_v47 = vld [vmem:[#allocation10 + $0x4c] ss:$16 sps:$4 sm:$0xff]   ;;  %v2291_v14 = vmov 0.0|0.0  }
  0x5a   :  { %319 = vmatpush1.bf16.msra.mxu0 %v1916_v15  ;;  %392 = vmatpush1.bf16.msra.mxu1 %v1917_v16  ;;  %v89_v45 = vld [vmem:[#allocation5 + $0x18] sm:$0xff]  ;;  %v2413_v46 = vld [vmem:[#allocation10 + $0x44] ss:$16 sps:$4 sm:$0xff]   ;;  %v2421_v49 = vld [vmem:[#allocation10 + $0x40] ss:$16 sps:$4 sm:$0xff]   ;;  %v132_v15 = vlaneseq  ;;  %s2294_s25 = smov [#allocation13]  }
  0x5b   :  { %320 = vmatprep.subr.bf16.mxu0 %v1918_v17  ;;  %393 = vmatprep.subr.bf16.mxu1 %v1920_v18  ;;  %v95_v48 = vpack.c.bf16 %v89_v45, %v88_v44  ;;  %v2423_v50 = vld [vmem:[#allocation10 + $0x48] ss:$16 sps:$4 sm:$0xff]   ;;  %v2427_v51 = vld [vmem:[#allocation10 + $0x64] ss:$16 sps:$4 sm:$0xff]   ;;  %v2431_v52 = vld [vmem:[#allocation10 + $0x6c] ss:$16 sps:$4 sm:$0xff]  }
  0x5c   :  { %v2433_v53 = vld [vmem:[#allocation10 + $0x60] ss:$16 sps:$4 sm:$0xff]   ;;  %v2435_v54 = vld [vmem:[#allocation10 + $0x68] ss:$16 sps:$4 sm:$0xff]   ;;  %v2441_v57 = vld [vmem:[#allocation10 + $0x84] ss:$16 sps:$4 sm:$0xff]  }
  0x5d   :  { %v90_v55 = vld [vmem:[#allocation5 + $0x20] sm:$0xff]  ;;  %v91_v56 = vld [vmem:[#allocation5 + $0x28] sm:$0xff]  ;;  %v92_v3 = vld [vmem:[#allocation5 + $0x30] sm:$0xff]  ;;  %v133_v16 = vshrl.u32 %v132_v15, 7  ;;  %s1741_s26 = sshll.u32 %s2294_s25, 4  ;;  %s1742_s26 = int_to_ptr.vmem [resolvable:$true] %s1741_s26 }
  0x5e   :  { %321 = vmatpush1.bf16.msra.mxu0 %v1922_v19  ;;  %394 = vmatpush1.bf16.msra.mxu1 %v1923_v20  ;;  %v2443_v58 = vld [vmem:[#allocation10 + $0x8c] ss:$16 sps:$4 sm:$0xff]   ;;  %v2447_v59 = vld [vmem:[#allocation10 + $0x80] ss:$16 sps:$4 sm:$0xff]   ;;  %v2449_v60 = vld [vmem:[#allocation10 + $0x88] ss:$16 sps:$4 sm:$0xff]   ;;  %v96_v61 = vpack.c.bf16 %v91_v56, %v90_v55  ;;  %p2255_p5 = scmp.lt.s32.totalorder %s1742_s26, %s1742_s26 }
  0x5f   :  { %322 = vmatprep.subr.bf16.mxu0 %v1924_v21  ;;  %395 = vmatprep.subr.bf16.mxu1 %v1926_v22  ;;  %v2451_v62 = vld [vmem:[#allocation10 + $0xa4] ss:$16 sps:$4 sm:$0xff]   ;;  %v2453_v63 = vld [vmem:[#allocation10 + $0xac] ss:$16 sps:$4 sm:$0xff]   ;;  %v2459_v1 = vld [vmem:[#allocation10 + $0xa0] ss:$16 sps:$4 sm:$0xff]  }
  0x60   :  { %v2463_v2 = vld [vmem:[#allocation10 + $0xa8] ss:$16 sps:$4 sm:$0xff]   ;;  %v2467_v5 = vld [vmem:[#allocation10 + $0xc4] ss:$16 sps:$4 sm:$0xff]   ;;  %v2469_v6 = vld [vmem:[#allocation10 + $0xcc] ss:$16 sps:$4 sm:$0xff]  }
  0x61   :  { %v93_v4 = vld [vmem:[#allocation5 + $0x38] sm:$0xff]  ;;  %v2475_v8 = vld [vmem:[#allocation10 + $0xc0] ss:$16 sps:$4 sm:$0xff]   ;;  %v2481_v10 = vld [vmem:[#allocation10 + $0xe4] ss:$16 sps:$4 sm:$0xff]   ;;  %v142_v17 = vsub.s32 2, %v133_v16 }
  0x62   :  { %323 = vmatpush1.bf16.msra.mxu0 %v1928_v23  ;;  %396 = vmatpush1.bf16.msra.mxu1 %v1929_v24  ;;  %v97_v7 = vpack.c.bf16 %v93_v4, %v92_v3  ;;  %v2477_v9 = vld [vmem:[#allocation10 + $0xc8] ss:$16 sps:$4 sm:$0xff]   ;;  %v2483_v11 = vld [vmem:[#allocation10 + $0xec] ss:$16 sps:$4 sm:$0xff]   ;;  %v2487_v12 = vld [vmem:[#allocation10 + $0xe0] ss:$16 sps:$4 sm:$0xff]  }
  0x63   :  { %324 = vmatprep.subr.bf16.mxu0 %v1930_v25  ;;  %397 = vmatprep.subr.bf16.mxu1 %v1932_v26  ;;  %v2489_v13 = vld [vmem:[#allocation10 + $0xe8] ss:$16 sps:$4 sm:$0xff]   ;;  %v146_v18 = vsub.s32 3, %v133_v16  ;;  %v134_v19 = vsub.s32 0, %v133_v16  ;;  %v130_v20 = vld [vmem:[%s2928_s3] sm:$0xf] }
  0x64   :  { %v138_v21 = vsub.s32 1, %v133_v16  ;;  %v2536_v22 = vrot.slane %v130_v20, %v142_v17  ;;  %s2250_s27 = scalar_lea.vmem %s1742_s26, 128 }
  0x65   :  { %v2542_v25 = vrot.slane %v130_v20, %v146_v18  ;;  %v135_v26 = vrot.slane %v130_v20, %v134_v19  ;;  %p2251_p4 = scmp.ne.s32.totalorder %s1742_s26, %s2250_s27  ;;  %p2256_p6 = scmp.lt.s32.totalorder %s2250_s27, %s2250_s27 }
  0x66   :  { %325 = vmatpush1.bf16.msra.mxu0 %v1934_v27  ;;  %398 = vmatpush1.bf16.msra.mxu1 %v1935_v28 }
  0x67   :  { %326 = vmatprep.subr.bf16.mxu0 %v1936_v29  ;;  %399 = vmatprep.subr.bf16.mxu1 %v1938_v30  ;;  %v139_v29 = vrot.slane %v130_v20, %v138_v21  ;;  %p2257_p7 = por %p2256_p6, %p2255_p5 }
  0x69   :  { %p2258_p8 = pnand %p2257_p7, %p2251_p4 }
  0x6a   :  { %327 = vmatpush1.bf16.msra.mxu0 %v1940_v31  ;;  %400 = vmatpush1.bf16.msra.mxu1 %v1941_v32 }
  0x6b   :  { %689 = vmatprep.subr.bf16.mxu0 %v2393_v35  ;;  %730 = vmatprep.subr.bf16.mxu1 %v2395_v36 }
  0x6d   :  { %345 = vmatmul.mubr.bf16.vlgmr.msra.gmra.mrb[0].mxu0 %v94_v37  ;;  %418 = vmatmul.mubr.bf16.vlgmr.msra.gmra.mrb[0].mxu1 %v94_v37 }
  0x6e   :  { %690 = vmatpush1.bf16.msra.mxu0 %v2397_v38  ;;  %731 = vmatpush1.bf16.msra.mxu1 %v2399_v39 }
  0x6f   :  { %691 = vmatprep.subr.bf16.mxu0 %v2403_v40  ;;  %732 = vmatprep.subr.bf16.mxu1 %v2405_v41 }
  0x70   :  { %354 = vmatprep.mubr.bf16.mxu0 %v2932_v0  ;;  %427 = vmatprep.mubr.bf16.mxu1 %v2932_v0 }
  0x72   :  { %692 = vmatpush1.bf16.msra.mxu0 %v2407_v42  ;;  %733 = vmatpush1.bf16.msra.mxu1 %v2409_v43 }
  0x73   :  { %693 = vmatprep.subr.bf16.mxu0 %v2413_v46  ;;  %734 = vmatprep.subr.bf16.mxu1 %v2417_v47 }
  0x75   :  { %355 = vmatmul.mubr.bf16.gmra.mrb[4].mxu0 %v95_v48  ;;  %428 = vmatmul.mubr.bf16.gmra.mrb[4].mxu1 %v95_v48 }
  0x76   :  { %694 = vmatpush1.bf16.msra.mxu0 %v2421_v49  ;;  %735 = vmatpush1.bf16.msra.mxu1 %v2423_v50 }
  0x77   :  { %695 = vmatprep.subr.bf16.mxu0 %v2427_v51  ;;  %736 = vmatprep.subr.bf16.mxu1 %v2431_v52 }
  0x78   :  { %364 = vmatprep.mubr.bf16.mxu0 %v2932_v0  ;;  %437 = vmatprep.mubr.bf16.mxu1 %v2932_v0 }
  0x7a   :  { %696 = vmatpush1.bf16.msra.mxu0 %v2433_v53  ;;  %737 = vmatpush1.bf16.msra.mxu1 %v2435_v54 }
  0x7b   :  { %697 = vmatprep.subr.bf16.mxu0 %v2441_v57  ;;  %738 = vmatprep.subr.bf16.mxu1 %v2443_v58 }
  0x7d   :  { %365 = vmatmul.mubr.bf16.gmra.mrb[8].mxu0 %v96_v61  ;;  %438 = vmatmul.mubr.bf16.gmra.mrb[8].mxu1 %v96_v61 }
  0x7e   :  { %698 = vmatpush1.bf16.msra.mxu0 %v2447_v59  ;;  %739 = vmatpush1.bf16.msra.mxu1 %v2449_v60 }
  0x7f   :  { %699 = vmatprep.subr.bf16.mxu0 %v2451_v62  ;;  %740 = vmatprep.subr.bf16.mxu1 %v2453_v63 }
  0x80   :  { %374 = vmatprep.mubr.bf16.mxu0 %v2932_v0  ;;  %447 = vmatprep.mubr.bf16.mxu1 %v2932_v0 }
  0x82   :  { %700 = vmatpush1.bf16.msra.mxu0 %v2459_v1  ;;  %741 = vmatpush1.bf16.msra.mxu1 %v2463_v2 }
  0x83   :  { %701 = vmatprep.subr.bf16.mxu0 %v2467_v5  ;;  %742 = vmatprep.subr.bf16.mxu1 %v2469_v6 }
  0x85   :  { %375 = vmatmul.mubr.bf16.gmra.mrb[12].mxu0 %v97_v7  ;;  %448 = vmatmul.mubr.bf16.gmra.mrb[12].mxu1 %v97_v7 }
  0x86   :  { %702 = vmatpush1.bf16.msra.mxu0 %v2475_v8  ;;  %743 = vmatpush1.bf16.msra.mxu1 %v2477_v9 }
  0x87   :  { %703 = vmatprep.subr.bf16.mxu0 %v2481_v10  ;;  %744 = vmatprep.subr.bf16.mxu1 %v2483_v11 }
  0x88   :  { %721 = vmatprep.mubr.bf16.mxu0 %v2932_v0  ;;  %762 = vmatprep.mubr.bf16.mxu1 %v2932_v0 }
  0x8a   :  { %704 = vmatpush1.bf16.msra.mxu0 %v2487_v12  ;;  %745 = vmatpush1.bf16.msra.mxu1 %v2489_v13 }
  0x8b   :  { %805 = vmatprep.subr.bf16.mxu0 %v2393_v35  ;;  %846 = vmatprep.subr.bf16.mxu1 %v2395_v36 }
  0x8d   :  { %722 = vmatmul.mubr.bf16.vlgmr.msra.gmra.mrb[16].mxu0 %v2291_v14  ;;  %763 = vmatmul.mubr.bf16.vlgmr.msra.gmra.mrb[16].mxu1 %v2291_v14 }
  0x8e   :  { %806 = vmatpush1.bf16.msra.mxu0 %v2397_v38  ;;  %847 = vmatpush1.bf16.msra.mxu1 %v2399_v39 }
  0x8f   :  { %807 = vmatprep.subr.bf16.mxu0 %v2403_v40  ;;  %848 = vmatprep.subr.bf16.mxu1 %v2405_v41 }
  0x90   :  { %837 = vmatprep.mubr.bf16.mxu0 %v2932_v0  ;;  %878 = vmatprep.mubr.bf16.mxu1 %v2932_v0 }
  0x92   :  { %808 = vmatpush1.bf16.msra.mxu0 %v2407_v42  ;;  %849 = vmatpush1.bf16.msra.mxu1 %v2409_v43 }
  0x93   :  { %809 = vmatprep.subr.bf16.mxu0 %v2413_v46  ;;  %850 = vmatprep.subr.bf16.mxu1 %v2417_v47 }
  0x96   :  { %810 = vmatpush1.bf16.msra.mxu0 %v2421_v49  ;;  %851 = vmatpush1.bf16.msra.mxu1 %v2423_v50 }
  0x97   :  { %811 = vmatprep.subr.bf16.mxu0 %v2427_v51  ;;  %852 = vmatprep.subr.bf16.mxu1 %v2431_v52 }
  0x9a   :  { %812 = vmatpush1.bf16.msra.mxu0 %v2433_v53  ;;  %853 = vmatpush1.bf16.msra.mxu1 %v2435_v54 }
  0x9b   :  { %813 = vmatprep.subr.bf16.mxu0 %v2441_v57  ;;  %854 = vmatprep.subr.bf16.mxu1 %v2443_v58 }
  0x9e   :  { %814 = vmatpush1.bf16.msra.mxu0 %v2447_v59  ;;  %855 = vmatpush1.bf16.msra.mxu1 %v2449_v60 }
  0x9f   :  { %815 = vmatprep.subr.bf16.mxu0 %v2451_v62  ;;  %856 = vmatprep.subr.bf16.mxu1 %v2453_v63 }
  0xa2   :  { %816 = vmatpush1.bf16.msra.mxu0 %v2459_v1  ;;  %857 = vmatpush1.bf16.msra.mxu1 %v2463_v2 }
  0xa3   :  { %817 = vmatprep.subr.bf16.mxu0 %v2467_v5  ;;  %858 = vmatprep.subr.bf16.mxu1 %v2469_v6 }
  0xa6   :  { %818 = vmatpush1.bf16.msra.mxu0 %v2475_v8  ;;  %859 = vmatpush1.bf16.msra.mxu1 %v2477_v9 }
  0xa7   :  { %819 = vmatprep.subr.bf16.mxu0 %v2481_v10  ;;  %860 = vmatprep.subr.bf16.mxu1 %v2483_v11 }
  0xaa   :  { %820 = vmatpush1.bf16.msra.mxu0 %v2487_v12  ;;  %861 = vmatpush1.bf16.msra.mxu1 %v2489_v13 }
  0xab   :  { %921 = vmatprep.subr.bf16.mxu0 %v2393_v35  ;;  %962 = vmatprep.subr.bf16.mxu1 %v2395_v36 }
 0x140   :  { %v2538_v23 = vpop.f32.mrb[0].mxu0  ;;  %v2540_v24 = vpop.f32.mrb[0].mxu1 }
 0x141   :  { %v348_v27 = vpop.f32.mrb[1].mxu0  ;;  %v421_v28 = vpop.f32.mrb[1].mxu1 }
 0x142   :  { %v350_v30 = vpop.f32.mrb[2].mxu0  ;;  %v423_v31 = vpop.f32.mrb[2].mxu1 }
 0x143   :  { %v2544_v32 = vadd.f32 %v350_v30, %v135_v26  ;;  %v352_v33 = vpop.f32.mrb[3].mxu0  ;;  %v2547_v34 = vadd.f32 %v423_v31, %v2536_v22  ;;  %v425_v37 = vpop.f32.mrb[3].mxu1 }
 0x144   :  { %v2549_v44 = vadd.f32 %v352_v33, %v139_v29  ;;  %v2552_v45 = vadd.f32 %v425_v37, %v2542_v25 }
 0x148   :  { %v356_v48 = vpop.f32.mrb[4].mxu0  ;;  %v429_v55 = vpop.f32.mrb[4].mxu1 }
 0x149   :  { %v2554_v56 = vadd.f32 %v356_v48, %v135_v26  ;;  %v358_v61 = vpop.f32.mrb[5].mxu0  ;;  %v2557_v3 = vadd.f32 %v429_v55, %v2536_v22  ;;  %v431_v4 = vpop.f32.mrb[5].mxu1 }
 0x14a   :  { %v2559_v7 = vadd.f32 %v358_v61, %v139_v29  ;;  %v360_v14 = vpop.f32.mrb[6].mxu0  ;;  %v2562_v15 = vadd.f32 %v431_v4, %v2542_v25  ;;  %v433_v16 = vpop.f32.mrb[6].mxu1 }
 0x14b   :  { %v2564_v17 = vadd.f32 %v360_v14, %v135_v26  ;;  %v362_v18 = vpop.f32.mrb[7].mxu0  ;;  %v2567_v19 = vadd.f32 %v433_v16, %v2536_v22  ;;  %v435_v20 = vpop.f32.mrb[7].mxu1 }
 0x14c   :  { %2934 = vst [vmem:[#allocation18_spill] sm:$0xff] %v2562_v15  ;;  %v2569_v21 = vadd.f32 %v362_v18, %v139_v29  ;;  %v2572_v30 = vadd.f32 %v435_v20, %v2542_v25 }
 0x14d   :  { %2935 = vst [vmem:[#allocation19_spill] sm:$0xff] %v2564_v17  ;;  %2936 = vst [vmem:[#allocation20_spill] sm:$0xff] %v2567_v19 }
 0x14e   :  { %2937 = vst [vmem:[#allocation21_spill] sm:$0xff] %v2569_v21  ;;  %2938 = vst [vmem:[#allocation22_spill] sm:$0xff] %v2572_v30 }
 0x150   :  { %v366_v31 = vpop.f32.mrb[8].mxu0  ;;  %v439_v33 = vpop.f32.mrb[8].mxu1 }
 0x151   :  { %v2574_v37 = vadd.f32 %v366_v31, %v135_v26  ;;  %v368_v48 = vpop.f32.mrb[9].mxu0  ;;  %v2577_v55 = vadd.f32 %v439_v33, %v2536_v22  ;;  %v441_v61 = vpop.f32.mrb[9].mxu1 }
 0x152   :  { %v2579_v4 = vadd.f32 %v368_v48, %v139_v29  ;;  %v370_v14 = vpop.f32.mrb[10].mxu0  ;;  %v2582_v16 = vadd.f32 %v441_v61, %v2542_v25  ;;  %v443_v18 = vpop.f32.mrb[10].mxu1 }
 0x153   :  { %2939 = vst [vmem:[#allocation23_spill] sm:$0xff] %v2574_v37  ;;  %2940 = vst [vmem:[#allocation24_spill] sm:$0xff] %v2577_v55  ;;  %v2584_v0 = vadd.f32 %v370_v14, %v135_v26  ;;  %v372_v20 = vpop.f32.mrb[11].mxu0  ;;  %v2587_v30 = vadd.f32 %v443_v18, %v2536_v22  ;;  %v445_v31 = vpop.f32.mrb[11].mxu1 }
 0x154   :  { %2941 = vst [vmem:[#allocation25_spill] sm:$0xff] %v2579_v4  ;;  %2942 = vst [vmem:[#allocation26_spill] sm:$0xff] %v2582_v16  ;;  %v2589_v37 = vadd.f32 %v372_v20, %v139_v29  ;;  %v2592_v33 = vadd.f32 %v445_v31, %v2542_v25 }
 0x155   :  { %2943 = vst [vmem:[#allocation27_spill] sm:$0xff] %v2584_v0  ;;  %2944 = vst [vmem:[#allocation28_spill] sm:$0xff] %v2587_v30 }
 0x156   :  { %2945 = vst [vmem:[#allocation29_spill] sm:$0xff] %v2589_v37  ;;  %2946 = vst [vmem:[#allocation30_spill] sm:$0xff] %v2592_v33 }
 0x158   :  { %v376_v55 = vpop.f32.mrb[12].mxu0  ;;  %v449_v48 = vpop.f32.mrb[12].mxu1 }
 0x159   :  { %v2594_v4 = vadd.f32 %v376_v55, %v135_v26  ;;  %v378_v21 = vpop.f32.mrb[13].mxu0  ;;  %v2597_v61 = vadd.f32 %v449_v48, %v2536_v22  ;;  %v451_v14 = vpop.f32.mrb[13].mxu1 }
 0x15a   :  { %v2599_v0 = vadd.f32 %v378_v21, %v139_v29  ;;  %v380_v16 = vpop.f32.mrb[14].mxu0  ;;  %v2602_v18 = vadd.f32 %v451_v14, %v2542_v25  ;;  %v453_v20 = vpop.f32.mrb[14].mxu1  ;;  %v347_v21 = vadd.f32 %v2538_v23, %v135_v26  ;;  %v349_v14 = vadd.f32 %v348_v27, %v139_v29 }
 0x15b   :  { %2947 = vst [vmem:[#allocation31_spill] sm:$0xff] %v2594_v4  ;;  %2948 = vst [vmem:[#allocation32_spill] sm:$0xff] %v2597_v61  ;;  %v2604_v37 = vadd.f32 %v380_v16, %v135_v26  ;;  %v382_v31 = vpop.f32.mrb[15].mxu0  ;;  %v2607_v33 = vadd.f32 %v453_v20, %v2536_v22  ;;  %v455_v55 = vpop.f32.mrb[15].mxu1 }
 0x15c   :  { %2949 = vst [vmem:[#allocation33_spill] sm:$0xff] %v2599_v0  ;;  %2950 = vst [vmem:[#allocation34_spill] sm:$0xff] %v2602_v18  ;;  %v2609_v4 = vadd.f32 %v382_v31, %v139_v29  ;;  %v2612_v48 = vadd.f32 %v455_v55, %v2542_v25  ;;  %v420_v0 = vadd.f32 %v2540_v24, %v2536_v22 }
 0x15d   :  { %2951 = vst [vmem:[#allocation35_spill] sm:$0xff] %v2604_v37  ;;  %2952 = vst [vmem:[#allocation36_spill] sm:$0xff] %v2607_v33  ;;  %v422_v18 = vadd.f32 %v421_v28, %v2542_v25 }
 0x15e   :  { %2953 = vst [vmem:[#allocation37_spill] sm:$0xff] %v2609_v4  ;;  %2954 = vst [vmem:[#allocation38_spill] sm:$0xff] %v2612_v48 }
 0x160   :  { %v723_v16 = vpop.f32.mrb[16].mxu0  ;;  %v764_v37 = vpop.f32.mrb[16].mxu1 }
 0x161   :  { %v771_v61 = vadd.f32 %v723_v16, %v347_v21  ;;  %v773_v30 = vadd.f32 %v764_v37, %v420_v0  ;;  %v725_v20 = vpop.f32.mrb[17].mxu0  ;;  %v766_v33 = vpop.f32.mrb[17].mxu1 }
 0x162   :  { %v772_v19 = vadd.f32 %v725_v20, %v349_v14  ;;  %v774_v31 = vadd.f32 %v766_v33, %v422_v18  ;;  %v727_v4 = vpop.f32.mrb[18].mxu0  ;;  %v768_v17 = vpop.f32.mrb[18].mxu1 }
 0x163   :  { %v1816_v55 = vmul.f32 -1.442695, %v771_v61  ;;  %v728_v48 = vpop.f32.mrb[19].mxu0  ;;  %v769_v15 = vpop.f32.mrb[19].mxu1 }
 0x164   :  { %v1817_v23 = vmul.f32 -1.442695, %v772_v19  ;;  %v1818_v22 = vmul.f32 -1.442695, %v774_v31 }
 0x165   :  { %1998 = vpow2.f32 %v1816_v55 }
 0x166   :  { %2000 = vpow2.f32 %v1817_v23 }
 0x167   :  { %2002 = vpow2.f32 %v1818_v22 }
 0x168   :  { %2004 = vtanh.f32 %v773_v30  ;;  %v2955_v30 = vmov 0  }
 0x16f   :  { %v1999_v24 = vpop.eup %1998 }
 0x170   :  { %v2001_v26 = vpop.eup %2000  ;;  %v778_v25 = vadd.f32 1.0, %v1999_v24 }
 0x171   :  { %v784_v27 = vadd.f32 1.0, %v2001_v26  ;;  %v2003_v0 = vpop.eup %2002 }
 0x172   :  { %2006 = vrcp.f32 %v778_v25  ;;  %v2005_v28 = vpop.eup %2004  ;;  %v791_v4 = vadd.f32 1.0, %v2003_v0 }
 0x173   :  { %2008 = vrcp.f32 %v784_v27 }
 0x174   :  { %2010 = vrcp.f32 %v791_v4 }
 0x17c   :  { %v2007_v29 = vpop.eup %2006 }
 0x17d   :  { %v2009_v37 = vpop.eup %2008  ;;  %v795_v17 = vmul.f32 %v2007_v29, %v2005_v28 }
 0x17e   :  { %v794_v33 = vmul.f32 0.0, %v2009_v37  ;;  %v2011_v19 = vpop.eup %2010 }
 0x180   :  { %v2618_v15 = vadd.f32 %v795_v17, %v794_v33 }
 0x182   :  { %2012 = vtanh.f32 %v2618_v15 }
 0x18c   :  { %v2013_v61 = vpop.eup %2012 }
 0x18d   :  { %v798_v18 = vmul.f32 %v2013_v61, %v2011_v19 }
 0x18f   :  { %v804_v48 = vpack.c.bf16 %v798_v18, %v798_v18 }
 0x191   :  { %838 = vmatmul.mubr.bf16.vlgmr.msra.gmra.mrb[20].mxu0 %v804_v48  ;;  %879 = vmatmul.mubr.bf16.vlgmr.msra.gmra.mrb[20].mxu1 %v804_v48 }
 0x192   :  { %922 = vmatpush1.bf16.msra.mxu0 %v2397_v38  ;;  %963 = vmatpush1.bf16.msra.mxu1 %v2399_v39 }
 0x193   :  { %923 = vmatprep.subr.bf16.mxu0 %v2403_v40  ;;  %964 = vmatprep.subr.bf16.mxu1 %v2405_v41 }
 0x194   :  { %953 = vmatprep.mubr.bf16.mxu0 %v2955_v30  ;;  %994 = vmatprep.mubr.bf16.mxu1 %v2955_v30 }
 0x196   :  { %924 = vmatpush1.bf16.msra.mxu0 %v2407_v42  ;;  %965 = vmatpush1.bf16.msra.mxu1 %v2409_v43 }
 0x197   :  { %925 = vmatprep.subr.bf16.mxu0 %v2413_v46  ;;  %966 = vmatprep.subr.bf16.mxu1 %v2417_v47 }
 0x19a   :  { %926 = vmatpush1.bf16.msra.mxu0 %v2421_v49  ;;  %967 = vmatpush1.bf16.msra.mxu1 %v2423_v50 }
 0x19b   :  { %927 = vmatprep.subr.bf16.mxu0 %v2427_v51  ;;  %968 = vmatprep.subr.bf16.mxu1 %v2431_v52 }
 0x19e   :  { %928 = vmatpush1.bf16.msra.mxu0 %v2433_v53  ;;  %969 = vmatpush1.bf16.msra.mxu1 %v2435_v54 }
 0x19f   :  { %929 = vmatprep.subr.bf16.mxu0 %v2441_v57  ;;  %970 = vmatprep.subr.bf16.mxu1 %v2443_v58 }
 0x1a2   :  { %930 = vmatpush1.bf16.msra.mxu0 %v2447_v59  ;;  %971 = vmatpush1.bf16.msra.mxu1 %v2449_v60 }
 0x1a3   :  { %931 = vmatprep.subr.bf16.mxu0 %v2451_v62  ;;  %972 = vmatprep.subr.bf16.mxu1 %v2453_v63 }
 0x1a6   :  { %932 = vmatpush1.bf16.msra.mxu0 %v2459_v1  ;;  %973 = vmatpush1.bf16.msra.mxu1 %v2463_v2 }
 0x1a7   :  { %933 = vmatprep.subr.bf16.mxu0 %v2467_v5  ;;  %974 = vmatprep.subr.bf16.mxu1 %v2469_v6 }
 0x1aa   :  { %934 = vmatpush1.bf16.msra.mxu0 %v2475_v8  ;;  %975 = vmatpush1.bf16.msra.mxu1 %v2477_v9 }
 0x1ab   :  { %935 = vmatprep.subr.bf16.mxu0 %v2481_v10  ;;  %976 = vmatprep.subr.bf16.mxu1 %v2483_v11 }
 0x1ae   :  { %936 = vmatpush1.bf16.msra.mxu0 %v2487_v12  ;;  %977 = vmatpush1.bf16.msra.mxu1 %v2489_v13 }
 0x1af   :  { %1037 = vmatprep.subr.bf16.mxu0 %v2393_v35  ;;  %1078 = vmatprep.subr.bf16.mxu1 %v2395_v36 }
 0x264   :  { %v839_v21 = vpop.f32.mrb[20].mxu0  ;;  %v880_v14 = vpop.f32.mrb[20].mxu1 }
 0x265   :  { %v887_v16 = vadd.f32 %v839_v21, %v2544_v32  ;;  %v889_v20 = vadd.f32 %v880_v14, %v2547_v34  ;;  %v841_v31 = vpop.f32.mrb[21].mxu0  ;;  %v882_v55 = vpop.f32.mrb[21].mxu1 }
 0x266   :  { %v888_v23 = vadd.f32 %v841_v31, %v2549_v44  ;;  %v890_v22 = vadd.f32 %v882_v55, %v2552_v45  ;;  %v843_v24 = vpop.f32.mrb[22].mxu0  ;;  %v884_v26 = vpop.f32.mrb[22].mxu1 }
 0x267   :  { %v1819_v25 = vmul.f32 -1.442695, %v887_v16  ;;  %v844_v27 = vpop.f32.mrb[23].mxu0  ;;  %v885_v0 = vpop.f32.mrb[23].mxu1 }
 0x268   :  { %v1820_v28 = vmul.f32 -1.442695, %v888_v23  ;;  %v1821_v29 = vmul.f32 -1.442695, %v890_v22 }
 0x269   :  { %2014 = vpow2.f32 %v1819_v25  ;;  %v2956_v25 = vld [vmem:[#allocation18_spill] sm:$0xff] }
 0x26a   :  { %2016 = vpow2.f32 %v1820_v28 }
 0x26b   :  { %2018 = vpow2.f32 %v1821_v29 }
 0x26c   :  { %2020 = vtanh.f32 %v889_v20 }
 0x273   :  { %v2015_v37 = vpop.eup %2014 }
 0x274   :  { %v2017_v17 = vpop.eup %2016  ;;  %v894_v32 = vadd.f32 1.0, %v2015_v37 }
 0x275   :  { %v900_v34 = vadd.f32 1.0, %v2017_v17  ;;  %v2019_v44 = vpop.eup %2018 }
 0x276   :  { %2022 = vrcp.f32 %v894_v32  ;;  %v2021_v4 = vpop.eup %2020  ;;  %v907_v61 = vadd.f32 1.0, %v2019_v44 }
 0x277   :  { %2024 = vrcp.f32 %v900_v34 }
 0x278   :  { %2026 = vrcp.f32 %v907_v61 }
 0x280   :  { %v2023_v45 = vpop.eup %2022 }
 0x281   :  { %v2025_v33 = vpop.eup %2024  ;;  %v911_v19 = vmul.f32 %v2023_v45, %v2021_v4 }
 0x282   :  { %v910_v18 = vmul.f32 %v2025_v33, %v2618_v15  ;;  %v2027_v21 = vpop.eup %2026 }
 0x284   :  { %v2660_v48 = vadd.f32 %v911_v19, %v910_v18 }
 0x286   :  { %2028 = vtanh.f32 %v2660_v48 }
 0x290   :  { %v2029_v14 = vpop.eup %2028 }
 0x291   :  { %v914_v16 = vmul.f32 %v2029_v14, %v2027_v21 }
 0x293   :  { %v920_v20 = vpack.c.bf16 %v914_v16, %v914_v16 }
 0x295   :  { %954 = vmatmul.mubr.bf16.vlgmr.msra.gmra.mrb[24].mxu0 %v920_v20  ;;  %995 = vmatmul.mubr.bf16.vlgmr.msra.gmra.mrb[24].mxu1 %v920_v20 }
 0x296   :  { %1038 = vmatpush1.bf16.msra.mxu0 %v2397_v38  ;;  %1079 = vmatpush1.bf16.msra.mxu1 %v2399_v39 }
 0x297   :  { %1039 = vmatprep.subr.bf16.mxu0 %v2403_v40  ;;  %1080 = vmatprep.subr.bf16.mxu1 %v2405_v41 }
 0x298   :  { %1069 = vmatprep.mubr.bf16.mxu0 %v2955_v30  ;;  %1110 = vmatprep.mubr.bf16.mxu1 %v2955_v30 }
 0x29a   :  { %1040 = vmatpush1.bf16.msra.mxu0 %v2407_v42  ;;  %1081 = vmatpush1.bf16.msra.mxu1 %v2409_v43 }
 0x29b   :  { %1041 = vmatprep.subr.bf16.mxu0 %v2413_v46  ;;  %1082 = vmatprep.subr.bf16.mxu1 %v2417_v47 }
 0x29e   :  { %1042 = vmatpush1.bf16.msra.mxu0 %v2421_v49  ;;  %1083 = vmatpush1.bf16.msra.mxu1 %v2423_v50 }
 0x29f   :  { %1043 = vmatprep.subr.bf16.mxu0 %v2427_v51  ;;  %1084 = vmatprep.subr.bf16.mxu1 %v2431_v52 }
 0x2a2   :  { %1044 = vmatpush1.bf16.msra.mxu0 %v2433_v53  ;;  %1085 = vmatpush1.bf16.msra.mxu1 %v2435_v54 }
 0x2a3   :  { %1045 = vmatprep.subr.bf16.mxu0 %v2441_v57  ;;  %1086 = vmatprep.subr.bf16.mxu1 %v2443_v58 }
 0x2a6   :  { %1046 = vmatpush1.bf16.msra.mxu0 %v2447_v59  ;;  %1087 = vmatpush1.bf16.msra.mxu1 %v2449_v60 }
 0x2a7   :  { %1047 = vmatprep.subr.bf16.mxu0 %v2451_v62  ;;  %1088 = vmatprep.subr.bf16.mxu1 %v2453_v63 }
 0x2aa   :  { %1048 = vmatpush1.bf16.msra.mxu0 %v2459_v1  ;;  %1089 = vmatpush1.bf16.msra.mxu1 %v2463_v2 }
 0x2ab   :  { %1049 = vmatprep.subr.bf16.mxu0 %v2467_v5  ;;  %1090 = vmatprep.subr.bf16.mxu1 %v2469_v6 }
 0x2ae   :  { %1050 = vmatpush1.bf16.msra.mxu0 %v2475_v8  ;;  %1091 = vmatpush1.bf16.msra.mxu1 %v2477_v9 }
 0x2af   :  { %1051 = vmatprep.subr.bf16.mxu0 %v2481_v10  ;;  %1092 = vmatprep.subr.bf16.mxu1 %v2483_v11 }
 0x2b2   :  { %1052 = vmatpush1.bf16.msra.mxu0 %v2487_v12  ;;  %1093 = vmatpush1.bf16.msra.mxu1 %v2489_v13 }
 0x2b3   :  { %1153 = vmatprep.subr.bf16.mxu0 %v2393_v35  ;;  %1194 = vmatprep.subr.bf16.mxu1 %v2395_v36 }
 0x368   :  { %v955_v15 = vpop.f32.mrb[24].mxu0  ;;  %v996_v31 = vpop.f32.mrb[24].mxu1 }
 0x369   :  { %v1003_v55 = vadd.f32 %v955_v15, %v2554_v56  ;;  %v1005_v23 = vadd.f32 %v996_v31, %v2557_v3  ;;  %v957_v22 = vpop.f32.mrb[25].mxu0  ;;  %v998_v24 = vpop.f32.mrb[25].mxu1 }
 0x36a   :  { %v1004_v26 = vadd.f32 %v957_v22, %v2559_v7  ;;  %v1006_v27 = vadd.f32 %v998_v24, %v2956_v25  ;;  %v959_v0 = vpop.f32.mrb[26].mxu0  ;;  %v1000_v28 = vpop.f32.mrb[26].mxu1  ;;  %v2958_v24 = vld [vmem:[#allocation20_spill] sm:$0xff] }
 0x36b   :  { %v1822_v29 = vmul.f32 -1.442695, %v1003_v55  ;;  %v960_v37 = vpop.f32.mrb[27].mxu0  ;;  %v1001_v17 = vpop.f32.mrb[27].mxu1  ;;  %v2959_v0 = vld [vmem:[#allocation21_spill] sm:$0xff] }
 0x36c   :  { %v1823_v32 = vmul.f32 -1.442695, %v1004_v26  ;;  %v1824_v34 = vmul.f32 -1.442695, %v1006_v27 }
 0x36d   :  { %2030 = vpow2.f32 %v1822_v29  ;;  %v2960_v29 = vld [vmem:[#allocation22_spill] sm:$0xff] }
 0x36e   :  { %2032 = vpow2.f32 %v1823_v32 }
 0x36f   :  { %2034 = vpow2.f32 %v1824_v34 }
 0x370   :  { %2036 = vtanh.f32 %v1005_v23  ;;  %v2957_v23 = vld [vmem:[#allocation19_spill] sm:$0xff] }
 0x377   :  { %v2031_v44 = vpop.eup %2030 }
 0x378   :  { %v2033_v4 = vpop.eup %2032  ;;  %v1010_v56 = vadd.f32 1.0, %v2031_v44 }
 0x379   :  { %v1016_v3 = vadd.f32 1.0, %v2033_v4  ;;  %v2035_v7 = vpop.eup %2034 }
 0x37a   :  { %2038 = vrcp.f32 %v1010_v56  ;;  %v2037_v45 = vpop.eup %2036  ;;  %v1023_v18 = vadd.f32 1.0, %v2035_v7 }
 0x37b   :  { %2040 = vrcp.f32 %v1016_v3 }
 0x37c   :  { %2042 = vrcp.f32 %v1023_v18 }
 0x384   :  { %v2039_v33 = vpop.eup %2038 }
 0x385   :  { %v2041_v19 = vpop.eup %2040  ;;  %v1027_v61 = vmul.f32 %v2039_v33, %v2037_v45 }
 0x386   :  { %v1026_v21 = vmul.f32 %v2041_v19, %v2660_v48  ;;  %v2043_v16 = vpop.eup %2042 }
 0x388   :  { %v2702_v14 = vadd.f32 %v1027_v61, %v1026_v21 }
 0x38a   :  { %2044 = vtanh.f32 %v2702_v14 }
 0x394   :  { %v2045_v20 = vpop.eup %2044 }
 0x395   :  { %v1030_v15 = vmul.f32 %v2045_v20, %v2043_v16 }
 0x397   :  { %v1036_v31 = vpack.c.bf16 %v1030_v15, %v1030_v15 }
 0x399   :  { %1070 = vmatmul.mubr.bf16.vlgmr.msra.gmra.mrb[28].mxu0 %v1036_v31  ;;  %1111 = vmatmul.mubr.bf16.vlgmr.msra.gmra.mrb[28].mxu1 %v1036_v31 }
 0x39a   :  { %1154 = vmatpush1.bf16.msra.mxu0 %v2397_v38  ;;  %1195 = vmatpush1.bf16.msra.mxu1 %v2399_v39 }
 0x39b   :  { %1155 = vmatprep.subr.bf16.mxu0 %v2403_v40  ;;  %1196 = vmatprep.subr.bf16.mxu1 %v2405_v41 }
 0x39c   :  { %1185 = vmatprep.mubr.bf16.mxu0 %v2955_v30  ;;  %1226 = vmatprep.mubr.bf16.mxu1 %v2955_v30 }
 0x39e   :  { %1156 = vmatpush1.bf16.msra.mxu0 %v2407_v42  ;;  %1197 = vmatpush1.bf16.msra.mxu1 %v2409_v43 }
 0x39f   :  { %1157 = vmatprep.subr.bf16.mxu0 %v2413_v46  ;;  %1198 = vmatprep.subr.bf16.mxu1 %v2417_v47 }
 0x3a2   :  { %1158 = vmatpush1.bf16.msra.mxu0 %v2421_v49  ;;  %1199 = vmatpush1.bf16.msra.mxu1 %v2423_v50 }
 0x3a3   :  { %1159 = vmatprep.subr.bf16.mxu0 %v2427_v51  ;;  %1200 = vmatprep.subr.bf16.mxu1 %v2431_v52 }
 0x3a6   :  { %1160 = vmatpush1.bf16.msra.mxu0 %v2433_v53  ;;  %1201 = vmatpush1.bf16.msra.mxu1 %v2435_v54 }
 0x3a7   :  { %1161 = vmatprep.subr.bf16.mxu0 %v2441_v57  ;;  %1202 = vmatprep.subr.bf16.mxu1 %v2443_v58 }
 0x3aa   :  { %1162 = vmatpush1.bf16.msra.mxu0 %v2447_v59  ;;  %1203 = vmatpush1.bf16.msra.mxu1 %v2449_v60 }
 0x3ab   :  { %1163 = vmatprep.subr.bf16.mxu0 %v2451_v62  ;;  %1204 = vmatprep.subr.bf16.mxu1 %v2453_v63 }
 0x3ae   :  { %1164 = vmatpush1.bf16.msra.mxu0 %v2459_v1  ;;  %1205 = vmatpush1.bf16.msra.mxu1 %v2463_v2 }
 0x3af   :  { %1165 = vmatprep.subr.bf16.mxu0 %v2467_v5  ;;  %1206 = vmatprep.subr.bf16.mxu1 %v2469_v6 }
 0x3b2   :  { %1166 = vmatpush1.bf16.msra.mxu0 %v2475_v8  ;;  %1207 = vmatpush1.bf16.msra.mxu1 %v2477_v9 }
 0x3b3   :  { %1167 = vmatprep.subr.bf16.mxu0 %v2481_v10  ;;  %1208 = vmatprep.subr.bf16.mxu1 %v2483_v11 }
 0x3b6   :  { %1168 = vmatpush1.bf16.msra.mxu0 %v2487_v12  ;;  %1209 = vmatpush1.bf16.msra.mxu1 %v2489_v13 }
 0x3b7   :  { %1269 = vmatprep.subr.bf16.mxu0 %v2393_v35  ;;  %1310 = vmatprep.subr.bf16.mxu1 %v2395_v36 }
 0x46c   :  { %v1071_v48 = vpop.f32.mrb[28].mxu0  ;;  %v1112_v55 = vpop.f32.mrb[28].mxu1 }
 0x46d   :  { %v1119_v22 = vadd.f32 %v1071_v48, %v2957_v23  ;;  %v1121_v26 = vadd.f32 %v1112_v55, %v2958_v24  ;;  %v1073_v25 = vpop.f32.mrb[29].mxu0  ;;  %v1114_v27 = vpop.f32.mrb[29].mxu1 }
 0x46e   :  { %v1120_v28 = vadd.f32 %v1073_v25, %v2959_v0  ;;  %v1122_v37 = vadd.f32 %v1114_v27, %v2960_v29  ;;  %v1075_v17 = vpop.f32.mrb[30].mxu0  ;;  %v1116_v32 = vpop.f32.mrb[30].mxu1 }
 0x46f   :  { %v1825_v34 = vmul.f32 -1.442695, %v1119_v22  ;;  %v1076_v44 = vpop.f32.mrb[31].mxu0  ;;  %v1117_v4 = vpop.f32.mrb[31].mxu1 }
 0x470   :  { %v1826_v35 = vmul.f32 -1.442695, %v1120_v28  ;;  %v1827_v36 = vmul.f32 -1.442695, %v1122_v37 }
 0x471   :  { %2046 = vpow2.f32 %v1825_v34 }
 0x472   :  { %2048 = vpow2.f32 %v1826_v35 }
 0x473   :  { %2050 = vpow2.f32 %v1827_v36 }
 0x474   :  { %2052 = vtanh.f32 %v1121_v26 }
 0x47b   :  { %v2047_v56 = vpop.eup %2046 }
 0x47c   :  { %v2049_v3 = vpop.eup %2048  ;;  %v1126_v7 = vadd.f32 1.0, %v2047_v56  ;;  %v2793_v56 = vld [vmem:[#allocation10] ss:$16 sps:$4 sm:$0xff]  }
 0x47d   :  { %v1132_v45 = vadd.f32 1.0, %v2049_v3  ;;  %v2051_v33 = vpop.eup %2050  ;;  %v2796_v3 = vld [vmem:[#allocation10 + $0x8] ss:$16 sps:$4 sm:$0xff]  }
 0x47e   :  { %2054 = vrcp.f32 %v1126_v7  ;;  %v2053_v19 = vpop.eup %2052  ;;  %v1139_v16 = vadd.f32 1.0, %v2051_v33  ;;  %v2799_v7 = vld [vmem:[#allocation10 + $0x24] ss:$16 sps:$4 sm:$0xff]   ;;  %v2807_v33 = vld [vmem:[#allocation10 + $0x20] ss:$16 sps:$4 sm:$0xff]  }
 0x47f   :  { %2056 = vrcp.f32 %v1132_v45  ;;  %v2802_v45 = vld [vmem:[#allocation10 + $0x2c] ss:$16 sps:$4 sm:$0xff]  }
 0x480   :  { %2058 = vrcp.f32 %v1139_v16  ;;  %v2822_v16 = vld [vmem:[#allocation10 + $0x48] ss:$16 sps:$4 sm:$0xff]  }
 0x488   :  { %v2055_v61 = vpop.eup %2054 }
 0x489   :  { %v2057_v18 = vpop.eup %2056  ;;  %v1143_v21 = vmul.f32 %v2055_v61, %v2053_v19  ;;  %v2810_v19 = vld [vmem:[#allocation10 + $0x28] ss:$16 sps:$4 sm:$0xff]   ;;  %v2813_v61 = vld [vmem:[#allocation10 + $0x44] ss:$16 sps:$4 sm:$0xff]  }
 0x48a   :  { %v1142_v20 = vmul.f32 %v2057_v18, %v2702_v14  ;;  %v2059_v31 = vpop.eup %2058  ;;  %v2816_v18 = vld [vmem:[#allocation10 + $0x4c] ss:$16 sps:$4 sm:$0xff]  }
 0x48c   :  { %v2744_v15 = vadd.f32 %v1143_v21, %v1142_v20  ;;  %v2819_v21 = vld [vmem:[#allocation10 + $0x40] ss:$16 sps:$4 sm:$0xff]   ;;  %v2825_v20 = vld [vmem:[#allocation10 + $0x64] ss:$16 sps:$4 sm:$0xff]  }
 0x48e   :  { %2060 = vtanh.f32 %v2744_v15 }
 0x498   :  { %v2061_v48 = vpop.eup %2060 }
 0x499   :  { %v1146_v55 = vmul.f32 %v2061_v48, %v2059_v31  ;;  %v2831_v31 = vld [vmem:[#allocation10 + $0x60] ss:$16 sps:$4 sm:$0xff]   ;;  %v2834_v48 = vld [vmem:[#allocation10 + $0x68] ss:$16 sps:$4 sm:$0xff]  }
 0x49b   :  { %v1152_v23 = vpack.c.bf16 %v1146_v55, %v1146_v55  ;;  %v2837_v55 = vld [vmem:[#allocation10 + $0x84] ss:$16 sps:$4 sm:$0xff]  }
 0x49d   :  { %1186 = vmatmul.mubr.bf16.vlgmr.msra.gmra.mrb[32].mxu0 %v1152_v23  ;;  %1227 = vmatmul.mubr.bf16.vlgmr.msra.gmra.mrb[32].mxu1 %v1152_v23  ;;  %v2840_v23 = vld [vmem:[#allocation10 + $0x8c] ss:$16 sps:$4 sm:$0xff]  }
 0x49e   :  { %1270 = vmatpush1.bf16.msra.mxu0 %v2397_v38  ;;  %1311 = vmatpush1.bf16.msra.mxu1 %v2399_v39  ;;  %v2779_v38 = vld [vmem:[#allocation10 + $0x4] ss:$16 sps:$4 sm:$0xff]   ;;  %v2782_v39 = vld [vmem:[#allocation10 + $0xc] ss:$16 sps:$4 sm:$0xff]  }
 0x49f   :  { %1271 = vmatprep.subr.bf16.mxu0 %v2403_v40  ;;  %1312 = vmatprep.subr.bf16.mxu1 %v2405_v41 }
 0x4a0   :  { %1301 = vmatprep.mubr.bf16.mxu0 %v2955_v30  ;;  %1342 = vmatprep.mubr.bf16.mxu1 %v2955_v30 }
 0x4a2   :  { %1272 = vmatpush1.bf16.msra.mxu0 %v2407_v42  ;;  %1313 = vmatpush1.bf16.msra.mxu1 %v2409_v43  ;;  %v2961_v42 = vld [vmem:[#allocation23_spill] sm:$0xff] }
 0x4a3   :  { %1273 = vmatprep.subr.bf16.mxu0 %v2413_v46  ;;  %1314 = vmatprep.subr.bf16.mxu1 %v2417_v47  ;;  %v2962_v46 = vld [vmem:[#allocation24_spill] sm:$0xff] }
 0x4a6   :  { %1274 = vmatpush1.bf16.msra.mxu0 %v2421_v49  ;;  %1315 = vmatpush1.bf16.msra.mxu1 %v2423_v50 }
 0x4a7   :  { %1275 = vmatprep.subr.bf16.mxu0 %v2427_v51  ;;  %1316 = vmatprep.subr.bf16.mxu1 %v2431_v52  ;;  %v2963_v51 = vld [vmem:[#allocation25_spill] sm:$0xff] }
 0x4aa   :  { %1276 = vmatpush1.bf16.msra.mxu0 %v2433_v53  ;;  %1317 = vmatpush1.bf16.msra.mxu1 %v2435_v54  ;;  %v2964_v53 = vld [vmem:[#allocation26_spill] sm:$0xff] }
 0x4ab   :  { %1277 = vmatprep.subr.bf16.mxu0 %v2441_v57  ;;  %1318 = vmatprep.subr.bf16.mxu1 %v2443_v58 }
 0x4ae   :  { %1278 = vmatpush1.bf16.msra.mxu0 %v2447_v59  ;;  %1319 = vmatpush1.bf16.msra.mxu1 %v2449_v60 }
 0x4af   :  { %1279 = vmatprep.subr.bf16.mxu0 %v2451_v62  ;;  %1320 = vmatprep.subr.bf16.mxu1 %v2453_v63 }
 0x4b2   :  { %1280 = vmatpush1.bf16.msra.mxu0 %v2459_v1  ;;  %1321 = vmatpush1.bf16.msra.mxu1 %v2463_v2 }
 0x4b3   :  { %1281 = vmatprep.subr.bf16.mxu0 %v2467_v5  ;;  %1322 = vmatprep.subr.bf16.mxu1 %v2469_v6 }
 0x4b6   :  { %1282 = vmatpush1.bf16.msra.mxu0 %v2475_v8  ;;  %1323 = vmatpush1.bf16.msra.mxu1 %v2477_v9 }
 0x4b7   :  { %1283 = vmatprep.subr.bf16.mxu0 %v2481_v10  ;;  %1324 = vmatprep.subr.bf16.mxu1 %v2483_v11 }
 0x4ba   :  { %1284 = vmatpush1.bf16.msra.mxu0 %v2487_v12  ;;  %1325 = vmatpush1.bf16.msra.mxu1 %v2489_v13 }
 0x4bb   :  { %1385 = vmatprep.subr.bf16.mxu0 %v2779_v38  ;;  %1426 = vmatprep.subr.bf16.mxu1 %v2782_v39 }
 0x570   :  { %v1187_v40 = vpop.f32.mrb[32].mxu0  ;;  %v1228_v41 = vpop.f32.mrb[32].mxu1 }
 0x571   :  { %v1235_v43 = vadd.f32 %v1187_v40, %v2961_v42  ;;  %v1237_v47 = vadd.f32 %v1228_v41, %v2962_v46  ;;  %v1189_v49 = vpop.f32.mrb[33].mxu0  ;;  %v1230_v50 = vpop.f32.mrb[33].mxu1  ;;  %v2843_v40 = vld [vmem:[#allocation10 + $0x80] ss:$16 sps:$4 sm:$0xff]   ;;  %v2846_v41 = vld [vmem:[#allocation10 + $0x88] ss:$16 sps:$4 sm:$0xff]  }
 0x572   :  { %v1236_v52 = vadd.f32 %v1189_v49, %v2963_v51  ;;  %v1238_v54 = vadd.f32 %v1230_v50, %v2964_v53  ;;  %v1191_v57 = vpop.f32.mrb[34].mxu0  ;;  %v1232_v58 = vpop.f32.mrb[34].mxu1  ;;  %v2849_v42 = vld [vmem:[#allocation10 + $0xa4] ss:$16 sps:$4 sm:$0xff]   ;;  %v2966_v46 = vld [vmem:[#allocation28_spill] sm:$0xff]  ;;  %v2968_v50 = vld [vmem:[#allocation30_spill] sm:$0xff] }
 0x573   :  { %v1828_v59 = vmul.f32 -1.442695, %v1235_v43  ;;  %v1192_v60 = vpop.f32.mrb[35].mxu0  ;;  %v1233_v62 = vpop.f32.mrb[35].mxu1  ;;  %v2852_v43 = vld [vmem:[#allocation10 + $0xac] ss:$16 sps:$4 sm:$0xff]  }
 0x574   :  { %v1829_v63 = vmul.f32 -1.442695, %v1236_v52  ;;  %v1830_v14 = vmul.f32 -1.442695, %v1238_v54  ;;  %v2967_v49 = vld [vmem:[#allocation29_spill] sm:$0xff] }
 0x575   :  { %2062 = vpow2.f32 %v1828_v59 }
 0x576   :  { %2064 = vpow2.f32 %v1829_v63 }
 0x577   :  { %2066 = vpow2.f32 %v1830_v14 }
 0x578   :  { %2068 = vtanh.f32 %v1237_v47 }
 0x57f   :  { %v2063_v22 = vpop.eup %2062 }
 0x580   :  { %v2065_v24 = vpop.eup %2064  ;;  %v1242_v26 = vadd.f32 1.0, %v2063_v22 }
 0x581   :  { %v1248_v25 = vadd.f32 1.0, %v2065_v24  ;;  %v2067_v27 = vpop.eup %2066 }
 0x582   :  { %2070 = vrcp.f32 %v1242_v26  ;;  %v2069_v0 = vpop.eup %2068  ;;  %v1255_v17 = vadd.f32 1.0, %v2067_v27 }
 0x583   :  { %2072 = vrcp.f32 %v1248_v25 }
 0x584   :  { %2074 = vrcp.f32 %v1255_v17  ;;  %v2154_v17 = vld [vmem:[#allocation10 + $0xc4] ss:$16 sps:$4 sm:$0xff]  }
 0x58c   :  { %v2071_v28 = vpop.eup %2070 }
 0x58d   :  { %v2073_v29 = vpop.eup %2072  ;;  %v1259_v37 = vmul.f32 %v2071_v28, %v2069_v0 }
 0x58e   :  { %v1258_v32 = vmul.f32 %v2073_v29, %v2744_v15  ;;  %v2075_v44 = vpop.eup %2074  ;;  %v2828_v15 = vld [vmem:[#allocation10 + $0x6c] ss:$16 sps:$4 sm:$0xff]  }
 0x590   :  { %v2790_v34 = vadd.f32 %v1259_v37, %v1258_v32  ;;  %v2153_v37 = vld [vmem:[#allocation10 + $0xa8] ss:$16 sps:$4 sm:$0xff]   ;;  %v2155_v32 = vld [vmem:[#allocation10 + $0xcc] ss:$16 sps:$4 sm:$0xff]  }
 0x592   :  { %2076 = vtanh.f32 %v2790_v34 }
 0x59c   :  { %v2077_v4 = vpop.eup %2076 }
 0x59d   :  { %v1262_v35 = vmul.f32 %v2077_v4, %v2075_v44  ;;  %v2157_v44 = vld [vmem:[#allocation10 + $0xc8] ss:$16 sps:$4 sm:$0xff]   ;;  %v2158_v4 = vld [vmem:[#allocation10 + $0xe4] ss:$16 sps:$4 sm:$0xff]  }
 0x59f   :  { %v1268_v36 = vpack.c.bf16 %v1262_v35, %v1262_v35  ;;  %v2159_v35 = vld [vmem:[#allocation10 + $0xec] ss:$16 sps:$4 sm:$0xff]  }
 0x5a1   :  { %1302 = vmatmul.mubr.bf16.vlgmr.msra.gmra.mrb[36].mxu0 %v1268_v36  ;;  %1343 = vmatmul.mubr.bf16.vlgmr.msra.gmra.mrb[36].mxu1 %v1268_v36  ;;  %v2160_v36 = vld [vmem:[#allocation10 + $0xe0] ss:$16 sps:$4 sm:$0xff]  }
 0x5a2   :  { %1386 = vmatpush1.bf16.msra.mxu0 %v2793_v56  ;;  %1427 = vmatpush1.bf16.msra.mxu1 %v2796_v3 }
 0x5a3   :  { %1387 = vmatprep.subr.bf16.mxu0 %v2799_v7  ;;  %1428 = vmatprep.subr.bf16.mxu1 %v2802_v45 }
 0x5a4   :  { %1417 = vmatprep.mubr.bf16.mxu0 %v2955_v30  ;;  %1458 = vmatprep.mubr.bf16.mxu1 %v2955_v30 }
 0x5a6   :  { %1388 = vmatpush1.bf16.msra.mxu0 %v2807_v33  ;;  %1429 = vmatpush1.bf16.msra.mxu1 %v2810_v19 }
 0x5a7   :  { %1389 = vmatprep.subr.bf16.mxu0 %v2813_v61  ;;  %1430 = vmatprep.subr.bf16.mxu1 %v2816_v18 }
 0x5aa   :  { %1390 = vmatpush1.bf16.msra.mxu0 %v2819_v21  ;;  %1431 = vmatpush1.bf16.msra.mxu1 %v2822_v16 }
 0x5ab   :  { %1391 = vmatprep.subr.bf16.mxu0 %v2825_v20  ;;  %1432 = vmatprep.subr.bf16.mxu1 %v2828_v15 }
 0x5ae   :  { %1392 = vmatpush1.bf16.msra.mxu0 %v2831_v31  ;;  %1433 = vmatpush1.bf16.msra.mxu1 %v2834_v48 }
 0x5af   :  { %1393 = vmatprep.subr.bf16.mxu0 %v2837_v55  ;;  %1434 = vmatprep.subr.bf16.mxu1 %v2840_v23 }
 0x5b2   :  { %1394 = vmatpush1.bf16.msra.mxu0 %v2843_v40  ;;  %1435 = vmatpush1.bf16.msra.mxu1 %v2846_v41 }
 0x5b3   :  { %1395 = vmatprep.subr.bf16.mxu0 %v2849_v42  ;;  %1436 = vmatprep.subr.bf16.mxu1 %v2852_v43 }
 0x5b6   :  { %1396 = vmatpush1.bf16.msra.mxu0 %v2459_v1  ;;  %1437 = vmatpush1.bf16.msra.mxu1 %v2463_v2 }
 0x5b7   :  { %1397 = vmatprep.subr.bf16.mxu0 %v2467_v5  ;;  %1438 = vmatprep.subr.bf16.mxu1 %v2469_v6  ;;  %v2965_v5 = vld [vmem:[#allocation27_spill] sm:$0xff] }
 0x5ba   :  { %1398 = vmatpush1.bf16.msra.mxu0 %v2475_v8  ;;  %1439 = vmatpush1.bf16.msra.mxu1 %v2477_v9 }
 0x5bb   :  { %1399 = vmatprep.subr.bf16.mxu0 %v2481_v10  ;;  %1440 = vmatprep.subr.bf16.mxu1 %v2483_v11 }
 0x5be   :  { %1400 = vmatpush1.bf16.msra.mxu0 %v2487_v12  ;;  %1441 = vmatpush1.bf16.msra.mxu1 %v2489_v13 }
 0x5bf   :  { %1501 = vmatprep.subr.bf16.mxu0 %v2779_v38  ;;  %1542 = vmatprep.subr.bf16.mxu1 %v2782_v39 }
 0x674   :  { %v1303_v1 = vpop.f32.mrb[36].mxu0  ;;  %v1344_v2 = vpop.f32.mrb[36].mxu1 }
 0x675   :  { %v1351_v6 = vadd.f32 %v1303_v1, %v2965_v5  ;;  %v1353_v8 = vadd.f32 %v1344_v2, %v2966_v46  ;;  %v1305_v47 = vpop.f32.mrb[37].mxu0  ;;  %v1346_v9 = vpop.f32.mrb[37].mxu1 }
 0x676   :  { %v1352_v10 = vadd.f32 %v1305_v47, %v2967_v49  ;;  %v1354_v11 = vadd.f32 %v1346_v9, %v2968_v50  ;;  %v1307_v51 = vpop.f32.mrb[38].mxu0  ;;  %v1348_v12 = vpop.f32.mrb[38].mxu1 }
 0x677   :  { %v1831_v52 = vmul.f32 -1.442695, %v1351_v6  ;;  %v1308_v13 = vpop.f32.mrb[39].mxu0  ;;  %v1349_v53 = vpop.f32.mrb[39].mxu1 }
 0x678   :  { %v1832_v38 = vmul.f32 -1.442695, %v1352_v10  ;;  %v1833_v39 = vmul.f32 -1.442695, %v1354_v11  ;;  %v1990_v53 = vld [vmem:[#allocation11] sm:$0xff]  }
 0x679   :  { %2078 = vpow2.f32 %v1831_v52 }
 0x67a   :  { %2080 = vpow2.f32 %v1832_v38  ;;  %v2292_v38 = vmov 0.0  }
 0x67b   :  { %2082 = vpow2.f32 %v1833_v39  ;;  %v1991_v39 = vld [vmem:[#allocation11 + $0x8] sm:$0xff]  }
 0x67c   :  { %2084 = vtanh.f32 %v1353_v8 }
 0x683   :  { %v2079_v54 = vpop.eup %2078 }
 0x684   :  { %v2081_v57 = vpop.eup %2080  ;;  %v1358_v58 = vadd.f32 1.0, %v2079_v54  ;;  %v1992_v54 = vld [vmem:[#allocation11 + $0x10] sm:$0xff]  }
 0x685   :  { %v1364_v59 = vadd.f32 1.0, %v2081_v57  ;;  %v2083_v60 = vpop.eup %2082  ;;  %v1993_v57 = vld [vmem:[#allocation11 + $0x18] sm:$0xff]  }
 0x686   :  { %2086 = vrcp.f32 %v1358_v58  ;;  %v2085_v62 = vpop.eup %2084  ;;  %v1371_v24 = vadd.f32 1.0, %v2083_v60  ;;  %v1994_v58 = vld [vmem:[#allocation11 + $0x20] sm:$0xff]   ;;  %v1996_v60 = vld [vmem:[#allocation11 + $0x30] sm:$0xff]  }
 0x687   :  { %2088 = vrcp.f32 %v1364_v59  ;;  %v1995_v59 = vld [vmem:[#allocation11 + $0x28] sm:$0xff]  }
 0x688   :  { %2090 = vrcp.f32 %v1371_v24 }
 0x690   :  { %v2087_v63 = vpop.eup %2086 }
 0x691   :  { %v2089_v14 = vpop.eup %2088  ;;  %v1375_v22 = vmul.f32 %v2087_v63, %v2085_v62  ;;  %v1997_v62 = vld [vmem:[#allocation11 + $0x38] sm:$0xff]  }
 0x692   :  { %v1374_v26 = vmul.f32 %v2089_v14, %v2790_v34  ;;  %v2091_v27 = vpop.eup %2090  ;;  %v2156_v34 = vld [vmem:[#allocation10 + $0xc0] ss:$16 sps:$4 sm:$0xff]  }
 0x694   :  { %v2872_v25 = vadd.f32 %v1375_v22, %v1374_v26  ;;  %v2973_v22 = vld [vmem:[#allocation35_spill] sm:$0xff]  ;;  %v2974_v26 = vld [vmem:[#allocation36_spill] sm:$0xff] }
 0x696   :  { %2092 = vtanh.f32 %v2872_v25 }
 0x6a0   :  { %v2093_v0 = vpop.eup %2092 }
 0x6a1   :  { %v1378_v28 = vmul.f32 %v2093_v0, %v2091_v27 }
 0x6a3   :  { %v1384_v29 = vpack.c.bf16 %v1378_v28, %v1378_v28  ;;  %v2975_v28 = vld [vmem:[#allocation37_spill] sm:$0xff] }
 0x6a5   :  { %1418 = vmatmul.mubr.bf16.vlgmr.msra.gmra.mrb[40].mxu0 %v1384_v29  ;;  %1459 = vmatmul.mubr.bf16.vlgmr.msra.gmra.mrb[40].mxu1 %v1384_v29 }
 0x6a6   :  { %1502 = vmatpush1.bf16.msra.mxu0 %v2793_v56  ;;  %1543 = vmatpush1.bf16.msra.mxu1 %v2796_v3  ;;  %v2161_v56 = vld [vmem:[#allocation10 + $0xe8] ss:$16 sps:$4 sm:$0xff]  }
 0x6a7   :  { %1503 = vmatprep.subr.bf16.mxu0 %v2799_v7  ;;  %1544 = vmatprep.subr.bf16.mxu1 %v2802_v45  ;;  %v2969_v45 = vld [vmem:[#allocation31_spill] sm:$0xff] }
 0x6a8   :  { %1533 = vmatprep.mubr.bf16.mxu0 %v2955_v30  ;;  %1574 = vmatprep.mubr.bf16.mxu1 %v2955_v30  ;;  %v2152_v30 = vld [vmem:[#allocation10 + $0xa0] ss:$16 sps:$4 sm:$0xff]  }
 0x6aa   :  { %1504 = vmatpush1.bf16.msra.mxu0 %v2807_v33  ;;  %1545 = vmatpush1.bf16.msra.mxu1 %v2810_v19  ;;  %v2970_v19 = vld [vmem:[#allocation32_spill] sm:$0xff] }
 0x6ab   :  { %1505 = vmatprep.subr.bf16.mxu0 %v2813_v61  ;;  %1546 = vmatprep.subr.bf16.mxu1 %v2816_v18 }
 0x6ae   :  { %1506 = vmatpush1.bf16.msra.mxu0 %v2819_v21  ;;  %1547 = vmatpush1.bf16.msra.mxu1 %v2822_v16  ;;  %v2971_v16 = vld [vmem:[#allocation33_spill] sm:$0xff] }
 0x6af   :  { %1507 = vmatprep.subr.bf16.mxu0 %v2825_v20  ;;  %1548 = vmatprep.subr.bf16.mxu1 %v2828_v15  ;;  %v2972_v15 = vld [vmem:[#allocation34_spill] sm:$0xff] }
 0x6b2   :  { %1508 = vmatpush1.bf16.msra.mxu0 %v2831_v31  ;;  %1549 = vmatpush1.bf16.msra.mxu1 %v2834_v48 }
 0x6b3   :  { %1509 = vmatprep.subr.bf16.mxu0 %v2837_v55  ;;  %1550 = vmatprep.subr.bf16.mxu1 %v2840_v23 }
 0x6b6   :  { %1510 = vmatpush1.bf16.msra.mxu0 %v2843_v40  ;;  %1551 = vmatpush1.bf16.msra.mxu1 %v2846_v41 }
 0x6b7   :  { %1511 = vmatprep.subr.bf16.mxu0 %v2849_v42  ;;  %1552 = vmatprep.subr.bf16.mxu1 %v2852_v43 }
 0x6ba   :  { %1512 = vmatpush1.bf16.msra.mxu0 %v2152_v30  ;;  %1553 = vmatpush1.bf16.msra.mxu1 %v2153_v37  ;;  %v2976_v30 = vld [vmem:[#allocation38_spill] sm:$0xff] }
 0x6bb   :  { %1513 = vmatprep.subr.bf16.mxu0 %v2154_v17  ;;  %1554 = vmatprep.subr.bf16.mxu1 %v2155_v32 }
 0x6be   :  { %1514 = vmatpush1.bf16.msra.mxu0 %v2156_v34  ;;  %1555 = vmatpush1.bf16.msra.mxu1 %v2157_v44 }
 0x6bf   :  { %1515 = vmatprep.subr.bf16.mxu0 %v2158_v4  ;;  %1556 = vmatprep.subr.bf16.mxu1 %v2159_v35 }
 0x6c2   :  { %1516 = vmatpush1.bf16.msra.mxu0 %v2160_v36  ;;  %1557 = vmatpush1.bf16.msra.mxu1 %v2161_v56 }
 0x6c3   :  { %1859 = vmatprep.subr.bf16.mxu0 %v2292_v38 }
 0x778   :  { %v1419_v3 = vpop.f32.mrb[40].mxu0  ;;  %v1460_v7 = vpop.f32.mrb[40].mxu1 }
 0x779   :  { %v1467_v33 = vadd.f32 %v1419_v3, %v2969_v45  ;;  %v1469_v61 = vadd.f32 %v1460_v7, %v2970_v19  ;;  %v1421_v18 = vpop.f32.mrb[41].mxu0  ;;  %v1462_v21 = vpop.f32.mrb[41].mxu1 }
 0x77a   :  { %v1468_v20 = vadd.f32 %v1421_v18, %v2971_v16  ;;  %v1470_v31 = vadd.f32 %v1462_v21, %v2972_v15  ;;  %v1423_v48 = vpop.f32.mrb[42].mxu0  ;;  %v1464_v55 = vpop.f32.mrb[42].mxu1 }
 0x77b   :  { %v1834_v23 = vmul.f32 -1.442695, %v1467_v33  ;;  %v1424_v40 = vpop.f32.mrb[43].mxu0  ;;  %v1465_v41 = vpop.f32.mrb[43].mxu1 }
 0x77c   :  { %v1835_v42 = vmul.f32 -1.442695, %v1468_v20  ;;  %v1836_v43 = vmul.f32 -1.442695, %v1470_v31  ;;  %v1840_v40 = vld [vmem:[%s2930_s5] ss:$0 sm:$0xff] }
 0x77d   :  { %2094 = vpow2.f32 %v1834_v23 }
 0x77e   :  { %2096 = vpow2.f32 %v1835_v42 }
 0x77f   :  { %2098 = vpow2.f32 %v1836_v43 }
 0x780   :  { %2100 = vtanh.f32 %v1469_v61 }
 0x787   :  { %v2095_v1 = vpop.eup %2094 }
 0x788   :  { %v2097_v2 = vpop.eup %2096  ;;  %v1474_v5 = vadd.f32 1.0, %v2095_v1 }
 0x789   :  { %v1480_v6 = vadd.f32 1.0, %v2097_v2  ;;  %v2099_v46 = vpop.eup %2098 }
 0x78a   :  { %2102 = vrcp.f32 %v1474_v5  ;;  %v2101_v8 = vpop.eup %2100  ;;  %v1487_v10 = vadd.f32 1.0, %v2099_v46 }
 0x78b   :  { %2104 = vrcp.f32 %v1480_v6 }
 0x78c   :  { %2106 = vrcp.f32 %v1487_v10 }
 0x794   :  { %v2103_v47 = vpop.eup %2102 }
 0x795   :  { %v2105_v9 = vpop.eup %2104  ;;  %v1491_v49 = vmul.f32 %v2103_v47, %v2101_v8 }
 0x796   :  { %v1490_v50 = vmul.f32 %v2105_v9, %v2872_v25  ;;  %v2107_v51 = vpop.eup %2106 }
 0x798   :  { %v2902_v11 = vadd.f32 %v1491_v49, %v1490_v50 }
 0x79a   :  { %2108 = vtanh.f32 %v2902_v11 }
 0x7a4   :  { %v2109_v12 = vpop.eup %2108 }
 0x7a5   :  { %v1494_v52 = vmul.f32 %v2109_v12, %v2107_v51 }
 0x7a7   :  { %v1500_v13 = vpack.c.bf16 %v1494_v52, %v1494_v52 }
 0x7a9   :  { %1534 = vmatmul.mubr.bf16.vlgmr.msra.gmra.mrb[44].mxu0 %v1500_v13  ;;  %1575 = vmatmul.mubr.bf16.vlgmr.msra.gmra.mrb[44].mxu1 %v1500_v13 }
 0x7aa   :  { %1860 = vmatpush3.bf16.msra.mxu0 %v1990_v53  ;;  %1875 = vmatprep.mubr.msk.bf16.mxu0 %vm2293_vm0, %v2292_v38 }
 0x7ab   :  { %1861 = vmatprep.subr.bf16.mxu0 %v2292_v38 }
 0x7ae   :  { %1862 = vmatpush3.bf16.msra.mxu0 %v1991_v39 }
 0x7af   :  { %1863 = vmatprep.subr.bf16.mxu0 %v2292_v38 }
 0x7b2   :  { %1864 = vmatpush3.bf16.msra.mxu0 %v1992_v54 }
 0x7b3   :  { %1865 = vmatprep.subr.bf16.mxu0 %v2292_v38 }
 0x7b6   :  { %1866 = vmatpush3.bf16.msra.mxu0 %v1993_v57 }
 0x7b7   :  { %1867 = vmatprep.subr.bf16.mxu0 %v2292_v38 }
 0x7ba   :  { %1868 = vmatpush3.bf16.msra.mxu0 %v1994_v58 }
 0x7bb   :  { %1869 = vmatprep.subr.bf16.mxu0 %v2292_v38 }
 0x7be   :  { %1870 = vmatpush3.bf16.msra.mxu0 %v1995_v59 }
 0x7bf   :  { %1871 = vmatprep.subr.bf16.mxu0 %v2292_v38 }
 0x7c2   :  { %1872 = vmatpush3.bf16.msra.mxu0 %v1996_v60 }
 0x7c3   :  { %1873 = vmatprep.subr.bf16.mxu0 %v2292_v38 }
 0x7c6   :  { %1874 = vmatpush3.bf16.msra.mxu0 %v1997_v62 }
 0x87c   :  { %v1535_v63 = vpop.f32.mrb[44].mxu0  ;;  %v1576_v14 = vpop.f32.mrb[44].mxu1 }
 0x87d   :  { %v1583_v24 = vadd.f32 %v1535_v63, %v2973_v22  ;;  %v1585_v25 = vadd.f32 %v1576_v14, %v2974_v26  ;;  %v1537_v27 = vpop.f32.mrb[45].mxu0  ;;  %v1578_v0 = vpop.f32.mrb[45].mxu1 }
 0x87e   :  { %v1584_v29 = vadd.f32 %v1537_v27, %v2975_v28  ;;  %v1586_v37 = vadd.f32 %v1578_v0, %v2976_v30  ;;  %v1539_v17 = vpop.f32.mrb[46].mxu0  ;;  %v1580_v32 = vpop.f32.mrb[46].mxu1 }
 0x87f   :  { %v1837_v34 = vmul.f32 -1.442695, %v1583_v24  ;;  %v1540_v44 = vpop.f32.mrb[47].mxu0  ;;  %v1581_v4 = vpop.f32.mrb[47].mxu1 }
 0x880   :  { %v1838_v35 = vmul.f32 -1.442695, %v1584_v29  ;;  %v1839_v36 = vmul.f32 -1.442695, %v1586_v37 }
 0x881   :  { %2110 = vpow2.f32 %v1837_v34 }
 0x882   :  { %2112 = vpow2.f32 %v1838_v35 }
 0x883   :  { %2114 = vpow2.f32 %v1839_v36 }
 0x884   :  { %2116 = vtanh.f32 %v1585_v25 }
 0x88b   :  { %v2111_v56 = vpop.eup %2110 }
 0x88c   :  { %v2113_v3 = vpop.eup %2112  ;;  %v1590_v7 = vadd.f32 1.0, %v2111_v56 }
 0x88d   :  { %v1596_v45 = vadd.f32 1.0, %v2113_v3  ;;  %v2115_v33 = vpop.eup %2114 }
 0x88e   :  { %2118 = vrcp.f32 %v1590_v7  ;;  %v2117_v19 = vpop.eup %2116  ;;  %v1603_v16 = vadd.f32 1.0, %v2115_v33 }
 0x88f   :  { %2120 = vrcp.f32 %v1596_v45 }
 0x890   :  { %2122 = vrcp.f32 %v1603_v16 }
 0x898   :  { %v2119_v61 = vpop.eup %2118 }
 0x899   :  { %v2121_v18 = vpop.eup %2120  ;;  %v1607_v21 = vmul.f32 %v2119_v61, %v2117_v19 }
 0x89a   :  { %v1606_v20 = vmul.f32 %v2121_v18, %v2902_v11  ;;  %v2123_v31 = vpop.eup %2122 }
 0x89c   :  { %v1608_v15 = vadd.f32 %v1607_v21, %v1606_v20 }
 0x89e   :  { %2124 = vtanh.f32 %v1608_v15 }
 0x8a8   :  { %v2125_v48 = vpop.eup %2124 }
 0x8a9   :  { %v1610_v55 = vmul.f32 %v2125_v48, %v2123_v31 }
 0x8ab   :  { %v1616_v23 = vpack.c.bf16 %v1610_v55, %v1610_v55 }
 0x8ad   :  { %1876 = vmatmul.mubr.bf16.vlgmr.msra.gmra.mrb[48].mxu0 %v1616_v23 }
 0x980   :  { %v1722_v41 = vpop.f32.mrb[48].mxu0 }
 0x981   :  { %v1723_v42 = vadd.f32 %v1840_v40, %v1722_v41  ;;  %v1877_v43 = vpop.f32.mrb[49].mxu0 }
 0x982   :  { %v1725_v1 = vpop.f32.mrb[50].mxu0 }
 0x983   :  { %v1849_v2 = vmul.f32 -1.442695, %v1723_v42  ;;  %v1878_v5 = vpop.f32.mrb[51].mxu0 }
 0x985   :  { %2126 = vpow2.f32 %v1849_v2 }
 0x98f   :  { %v2127_v6 = vpop.eup %2126 }
 0x990   :  { %v1731_v46 = vadd.f32 1.0, %v2127_v6 }
 0x992   :  { %2128 = vrcp.f32 %v1731_v46 }
 0x99c   :  { %v2129_v8 = vpop.eup %2128 }
 0x99d   :  { %1734 = vst [vmem:[#allocation13] sm:$0xff] %v2129_v8 }
 0x99e   :  { %2261 = shalt.err (!%p2258_p8)
}
 0x99f   :  { %s2262_s29 = scalar_lea.hbm %s2931_s6, 128 }
 0x9a0   :  { %p2263_p9 = scmp.ne.s32.totalorder %s2931_s6, %s2262_s29  ;;  %p2266_p10 = scmp.lt.u32.totalorder %s2262_s29, %s2931_s6 }
 0x9a2   :  { %p2268_p11 = pnand %p2266_p10, %p2263_p9 }
 0x9a4   :  { %2271 = shalt.err (!%p2268_p11)
}
 0x9a5   :  { %1744 = dma.vmem_to_hbm [thread:$0]  %s1742_s26, 128, %s2931_s6, [#allocation7]  }
 0x9a6   :  { %2278 = dma.done.wait [#allocation7], 128  }
 0x9a7   :  { %2279 = vsyncadd [#allocation7], 4294967168 }
 0x9a8   :  { %1748 = vsyncpa [#allocation6], 1 }
 0x9a9   :  { %1749 = vsyncpa [#allocation9], 1 }
 0x9aa   :  { %1750 = vsyncpa [#allocation12], 1 }
 0x9ab   :  { %1751 = vsyncpa [#allocation7], 1 }

</bundles_post_ra>
